<compile_context>
chip_gen: v7x
topology: tpu7x:2x2x1
jax: 0.10.0
libtpu: 0.0.40
codegen_flags: <defaults>
</compile_context>

<pallas_src>
import functools

import jax
import jax.numpy as jnp
from jax.experimental import pallas as pl
from jax.experimental.pallas import tpu as pltpu

EPS = 1e-5
LANE = 128


# ------------------------------ small helpers ------------------------------- #

def _ceil_to(x, m):
    return ((x + m - 1) // m) * m


def _pad_axis(a, axis, target):
    amt = target - a.shape[axis]
    if amt == 0:
        return a
    widths = [(0, 0)] * a.ndim
    widths[axis] = (0, amt)
    return jnp.pad(a, widths)


def _pad_rows(a, rows):
    if a.shape[0] == rows:
        return a
    return jnp.pad(a, ((0, rows - a.shape[0]), (0, 0)))


@functools.lru_cache(maxsize=None)
def _vmem_config():
    """(live-buffer budget, vmem_limit_bytes), generation-aware."""
    try:
        info = pltpu.get_tpu_info()
        cap = int(getattr(info, "vmem_capacity_bytes", 64 << 20))
    except Exception:
        cap = 64 << 20
    cap = max(cap, 32 << 20)
    limit = min((cap // 4) * 3, 96 << 20)   # 48 MiB on v7x, 96 MiB on v5e/v6e
    return limit // 2, limit


def _gemm_tile_m(m, kp, cout, budget, cap=2048):
    """Largest M tile whose working set (pinned weights counted double-buffered)
    fits the VMEM budget."""
    tm = cap
    while tm > 8:
        need = (2 * tm * kp * 2        # double-buffered bf16 lhs tiles
                + 2 * kp * cout * 2    # pinned bf16 weights (x2 buffers)
                + 2 * tm * cout * 2    # double-buffered bf16 output tiles
                + 2 * 8 * cout * 4)    # partial-stats blocks
        if need <= budget:
            break
        tm //= 2
    return max(8, min(tm, _ceil_to(m, 8)))


def _row_tile(m, bytes_per_row, budget, cap=2048):
    """Row tile for the elementwise epilogue; prefers an exact divisor of m so
    no padding copies are needed.  Returns (tile, padded_rows)."""
    tm = cap
    while tm > 8 and 2 * tm * bytes_per_row > budget:
        tm //= 2
    t = tm
    while t >= 8:
        if m % t == 0:
            return t, m
        t //= 2
    tm = max(8, min(tm, _ceil_to(m, 8)))
    return tm, _ceil_to(m, tm)


# ----------------------------- in-kernel helpers ----------------------------- #

def _bn_affine(stats, gamma, beta, inv_m):
    """Fold batch statistics (rows 0/1 = sum / sum-of-squares) into per-channel
    (scale, bias)."""
    mean = stats[0:1, :] * inv_m
    var = stats[1:2, :] * inv_m - mean * mean
    scale = gamma * jax.lax.rsqrt(var + EPS)
    bias = beta - mean * scale
    return scale, bias


def _conv3x3_acc(window, w_ref, ho, wo):
    """9 shifted MXU matmuls; window(kh, kw) -> (ho, wo, cin) bf16."""
    cout = w_ref.shape[2]
    acc = jnp.zeros((ho * wo, cout), jnp.float32)
    for kh in range(3):
        for kw in range(3):
            win = window(kh, kw)
            acc = acc + jnp.dot(win.reshape(ho * wo, win.shape[-1]),
                                w_ref[3 * kh + kw],
                                preferred_element_type=jnp.float32)
    return acc


def _store_partial_stats(st_ref, acc):
    """Write per-block partial [sum; sum_sq] (rows 2..7 padding) from f32 acc."""
    st_ref[...] = jnp.zeros_like(st_ref)
    st_ref[0:1, :] = jnp.sum(acc, axis=0, keepdims=True)
    st_ref[1:2, :] = jnp.sum(acc * acc, axis=0, keepdims=True)


# ----------------------------- Pallas kernels ------------------------------- #

def conv3x3_stats_kernel(x_ref, w_ref, y_ref, st_ref, *, ho, wo):
    """Stride-1 3x3 conv of one sample (input spatially pre-padded) + stats."""
    acc = _conv3x3_acc(lambda kh, kw: x_ref[0, kh:kh + ho, kw:kw + wo, :],
                       w_ref, ho, wo)
    y_ref[...] = acc.reshape(1, ho, wo, -1).astype(y_ref.dtype)
    _store_partial_stats(st_ref, acc)


def bn_relu_conv3x3_stats_kernel(y1p_ref, mask_ref, st1_ref, g1_ref, b1_ref,
                                 w2_ref, y2_ref, st2_ref, abuf, *, ho, wo, inv_m):
    """BN1 + ReLU applied to raw conv1 output (spatially pre-padded with zeros,
    border re-zeroed via mask), then stride-1 3x3 conv2 + stats."""
    scale, bias = _bn_affine(st1_ref[...], g1_ref[...], b1_ref[...], inv_m)
    a = (y1p_ref[0].astype(jnp.float32) * scale.reshape(1, 1, -1)
         + bias.reshape(1, 1, -1))
    a = jnp.maximum(a, 0.0) * mask_ref[0]
    abuf[...] = a.astype(abuf.dtype)
    acc = _conv3x3_acc(lambda kh, kw: abuf[kh:kh + ho, kw:kw + wo, :],
                       w2_ref, ho, wo)
    y2_ref[...] = acc.reshape(1, ho, wo, -1).astype(y2_ref.dtype)
    _store_partial_stats(st2_ref, acc)


def gemm_stats_kernel(p_ref, w_ref, y_ref, st_ref):
    """Row-tiled GEMM (im2col conv1 fallback / 1x1 projection) + partial stats."""
    acc = jnp.dot(p_ref[...], w_ref[...], preferred_element_type=jnp.float32)
    y_ref[...] = acc.astype(y_ref.dtype)
    _store_partial_stats(st_ref, acc)


def bn_id_add_relu_kernel(y2_ref, st2_ref, g2_ref, b2_ref, res_ref, o_ref, *, inv_m):
    sc2, bi2 = _bn_affine(st2_ref[...], g2_ref[...], b2_ref[...], inv_m)
    out = y2_ref[...].astype(jnp.float32) * sc2 + bi2 + res_ref[...]
    o_ref[...] = jnp.maximum(out, 0.0).astype(o_ref.dtype)


def bn_proj_add_relu_kernel(y2_ref, st2_ref, g2_ref, b2_ref,
                            ysc_ref, stsc_ref, gs_ref, bs_ref, o_ref, *, inv_m):
    sc2, bi2 = _bn_affine(st2_ref[...], g2_ref[...], b2_ref[...], inv_m)
    scs, bis = _bn_affine(stsc_ref[...], gs_ref[...], bs_ref[...], inv_m)
    out = (y2_ref[...].astype(jnp.float32) * sc2 + bi2
           + ysc_ref[...].astype(jnp.float32) * scs + bis)
    o_ref[...] = jnp.maximum(out, 0.0).astype(o_ref.dtype)


# --------------------------- pallas_call wrappers --------------------------- #

def _conv3x3_s1_call(x_sp, w9, ho, wo, limit):
    n, hp, wp, cin = x_sp.shape
    cout = w9.shape[-1]
    kern = functools.partial(conv3x3_stats_kernel, ho=ho, wo=wo)
    y, stp = pl.pallas_call(
        kern,
        out_shape=(jax.ShapeDtypeStruct((n, ho, wo, cout), jnp.bfloat16),
                   jax.ShapeDtypeStruct((n * 8, cout), jnp.float32)),
        grid=(n,),
        in_specs=[pl.BlockSpec((1, hp, wp, cin), lambda i: (i, 0, 0, 0)),
                  pl.BlockSpec((9, cin, cout), lambda i: (0, 0, 0))],
        out_specs=(pl.BlockSpec((1, ho, wo, cout), lambda i: (i, 0, 0, 0)),
                   pl.BlockSpec((8, cout), lambda i: (i, 0))),
        compiler_params=pltpu.CompilerParams(
            dimension_semantics=("parallel",), vmem_limit_bytes=limit),
        cost_estimate=pl.CostEstimate(
            flops=int(2 * n * ho * wo * 9 * cin * cout), transcendentals=0,
            bytes_accessed=int(2 * n * (hp * wp * cin + ho * wo * cout)
                               + 2 * 9 * cin * cout)),
    )(x_sp, w9)
    return y, jnp.sum(stp.reshape(n, 8, cout), axis=0)


def _bn_conv3x3_s1_call(y1p, mask, st1, g1, b1, w9, true_m, ho, wo, limit):
    n, hp, wp, c = y1p.shape
    cout = w9.shape[-1]
    kern = functools.partial(bn_relu_conv3x3_stats_kernel,
                             ho=ho, wo=wo, inv_m=1.0 / true_m)
    y2, stp = pl.pallas_call(
        kern,
        out_shape=(jax.ShapeDtypeStruct((n, ho, wo, cout), jnp.bfloat16),
                   jax.ShapeDtypeStruct((n * 8, cout), jnp.float32)),
        grid=(n,),
        in_specs=[pl.BlockSpec((1, hp, wp, c), lambda i: (i, 0, 0, 0)),
                  pl.BlockSpec((1, hp, wp, 1), lambda i: (0, 0, 0, 0)),
                  pl.BlockSpec((8, c), lambda i: (0, 0)),
                  pl.BlockSpec((1, c), lambda i: (0, 0)),
                  pl.BlockSpec((1, c), lambda i: (0, 0)),
                  pl.BlockSpec((9, c, cout), lambda i: (0, 0, 0))],
        out_specs=(pl.BlockSpec((1, ho, wo, cout), lambda i: (i, 0, 0, 0)),
                   pl.BlockSpec((8, cout), lambda i: (i, 0))),
        scratch_shapes=[pltpu.VMEM((hp, wp, c), jnp.bfloat16)],
        compiler_params=pltpu.CompilerParams(
            dimension_semantics=("parallel",), vmem_limit_bytes=limit),
        cost_estimate=pl.CostEstimate(
            flops=int(2 * n * ho * wo * 9 * c * cout + 4 * n * hp * wp * c),
            transcendentals=int(cout),
            bytes_accessed=int(2 * n * (hp * wp * c + ho * wo * cout)
                               + 2 * 9 * c * cout)),
    )(y1p, mask, st1, g1, b1, w9)
    return y2, jnp.sum(stp.reshape(n, 8, cout), axis=0)


def _gemm_stats_call(p, w, tile_m, limit):
    mp, kp = p.shape
    cout = w.shape[1]
    t = mp // tile_m
    y, stp = pl.pallas_call(
        gemm_stats_kernel,
        out_shape=(jax.ShapeDtypeStruct((mp, cout), jnp.bfloat16),
                   jax.ShapeDtypeStruct((t * 8, cout), jnp.float32)),
        grid=(t,),
        in_specs=[pl.BlockSpec((tile_m, kp), lambda i: (i, 0)),
                  pl.BlockSpec((kp, cout), lambda i: (0, 0))],
        out_specs=(pl.BlockSpec((tile_m, cout), lambda i: (i, 0)),
                   pl.BlockSpec((8, cout), lambda i: (i, 0))),
        compiler_params=pltpu.CompilerParams(
            dimension_semantics=("parallel",), vmem_limit_bytes=limit),
        cost_estimate=pl.CostEstimate(
            flops=int(2 * mp * kp * cout), transcendentals=0,
            bytes_accessed=int(2 * mp * (kp + cout) + 2 * kp * cout)),
    )(p, w)
    return y, jnp.sum(stp.reshape(t, 8, cout), axis=0)


def _bn_id_add_relu(y2, st2, g2, b2, res, true_m, tile_m, limit):
    mp, cp = y2.shape
    kern = functools.partial(bn_id_add_relu_kernel, inv_m=1.0 / true_m)
    return pl.pallas_call(
        kern,
        out_shape=jax.ShapeDtypeStruct((mp, cp), jnp.float32),
        grid=(mp // tile_m,),
        in_specs=[pl.BlockSpec((tile_m, cp), lambda i: (i, 0)),
                  pl.BlockSpec((8, cp), lambda i: (0, 0)),
                  pl.BlockSpec((1, cp), lambda i: (0, 0)),
                  pl.BlockSpec((1, cp), lambda i: (0, 0)),
                  pl.BlockSpec((tile_m, cp), lambda i: (i, 0))],
        out_specs=pl.BlockSpec((tile_m, cp), lambda i: (i, 0)),
        compiler_params=pltpu.CompilerParams(
            dimension_semantics=("parallel",), vmem_limit_bytes=limit),
        cost_estimate=pl.CostEstimate(flops=int(5 * mp * cp), transcendentals=int(cp),
                                      bytes_accessed=int(mp * cp * (2 + 4 + 4))),
    )(y2, st2, g2, b2, res)


def _bn_proj_add_relu(y2, st2, g2, b2, ysc, stsc, gs, bs, true_m, tile_m, limit):
    mp, cp = y2.shape
    kern = functools.partial(bn_proj_add_relu_kernel, inv_m=1.0 / true_m)
    return pl.pallas_call(
        kern,
        out_shape=jax.ShapeDtypeStruct((mp, cp), jnp.float32),
        grid=(mp // tile_m,),
        in_specs=[pl.BlockSpec((tile_m, cp), lambda i: (i, 0)),
                  pl.BlockSpec((8, cp), lambda i: (0, 0)),
                  pl.BlockSpec((1, cp), lambda i: (0, 0)),
                  pl.BlockSpec((1, cp), lambda i: (0, 0)),
                  pl.BlockSpec((tile_m, cp), lambda i: (i, 0)),
                  pl.BlockSpec((8, cp), lambda i: (0, 0)),
                  pl.BlockSpec((1, cp), lambda i: (0, 0)),
                  pl.BlockSpec((1, cp), lambda i: (0, 0))],
        out_specs=pl.BlockSpec((tile_m, cp), lambda i: (i, 0)),
        compiler_params=pltpu.CompilerParams(
            dimension_semantics=("parallel",), vmem_limit_bytes=limit),
        cost_estimate=pl.CostEstimate(flops=int(8 * mp * cp), transcendentals=int(2 * cp),
                                      bytes_accessed=int(mp * cp * (2 + 2 + 4))),
    )(y2, st2, g2, b2, ysc, stsc, gs, bs)


# ------------------------------- JAX glue ----------------------------------- #

def im2col(x, k, stride, pad):
    """x: (N,H,W,C) -> (N*Ho*Wo, k*k*C), patch order [kh][kw][c]."""
    N, H, W, C = x.shape
    if pad:
        x = jnp.pad(x, ((0, 0), (pad, pad), (pad, pad), (0, 0)))
    Ho = (H + 2 * pad - k) // stride + 1
    Wo = (W + 2 * pad - k) // stride + 1
    cols = []
    for kh in range(k):
        for kw in range(k):
            cols.append(x[:, kh:kh + stride * (Ho - 1) + 1:stride,
                          kw:kw + stride * (Wo - 1) + 1:stride, :])
    patches = jnp.concatenate(cols, axis=-1)
    return patches.reshape(N * Ho * Wo, k * k * C), (N, Ho, Wo)


def residual_block_forward(x_nchw, params, stride):
    budget, limit = _vmem_config()
    x = jnp.transpose(x_nchw, (0, 2, 3, 1)).astype(jnp.float32)   # NCHW -> NHWC
    N, H, W, cin = x.shape
    w1, g1, b1 = params["w1"], params["g1"], params["b1"]
    w2, g2, b2 = params["w2"], params["g2"], params["b2"]
    proj = params.get("proj")
    cout = w1.shape[-1]
    if proj is None:
        assert cin == cout and stride == 1, \
            "identity shortcut requires in_channels == out_channels and stride == 1"

    cpi = _ceil_to(cin, LANE)
    cpo = _ceil_to(cout, LANE)
    Ho = (H + 2 - 3) // stride + 1
    Wo = (W + 2 - 3) // stride + 1
    M = N * Ho * Wo

    g1p, b1p = _pad_axis(g1, 1, cpo), _pad_axis(b1, 1, cpo)
    g2p, b2p = _pad_axis(g2, 1, cpo), _pad_axis(b2, 1, cpo)

    # ---- conv1 (+ partial batch stats) -------------------------------------- #
    if stride == 1 and Wo % 8 == 0:
        # in-kernel 9-shifted-matmul conv on the spatially padded NHWC input
        xin = _pad_axis(x, 3, cpi).astype(jnp.bfloat16)
        x_sp = jnp.pad(xin, ((0, 0), (1, 1), (1, 1), (0, 0)))
        w1k = _pad_axis(_pad_axis(w1, 2, cpi), 3, cpo)
        w1k = w1k.reshape(9, cpi, cpo).astype(jnp.bfloat16)
        y1, st1 = _conv3x3_s1_call(x_sp, w1k, Ho, Wo, limit)
    else:
        # stride >= 2: im2col fallback with whole-K padding + bf16 patches
        p1, _ = im2col(x.astype(jnp.bfloat16), 3, stride, 1)      # (M, 9*cin)
        kp1 = _ceil_to(9 * cin, LANE)
        p1 = _pad_axis(p1, 1, kp1)
        w1f = _pad_axis(_pad_axis(w1.reshape(9 * cin, cout), 0, kp1), 1, cpo)
        w1f = w1f.astype(jnp.bfloat16)
        tm1 = _gemm_tile_m(M, kp1, cpo, budget)
        y1f, st1 = _gemm_stats_call(_pad_rows(p1, _ceil_to(M, tm1)), w1f, tm1, limit)
        y1 = y1f[:M].reshape(N, Ho, Wo, cpo)

    # ---- conv2 with fused BN1 + ReLU on its input path ----------------------- #
    w2k = _pad_axis(_pad_axis(w2, 2, cpo), 3, cpo).reshape(9, cpo, cpo)
    w2k = w2k.astype(jnp.bfloat16)
    if Wo % 8 == 0:
        y1p = jnp.pad(y1, ((0, 0), (1, 1), (1, 1), (0, 0)))       # raw, zero border
        mask = jnp.zeros((1, Ho + 2, Wo + 2, 1), jnp.float32)
        mask = mask.at[:, 1:Ho + 1, 1:Wo + 1, :].set(1.0)
        y2, st2 = _bn_conv3x3_s1_call(y1p, mask, st1, g1p, b1p, w2k, M, Ho, Wo, limit)
        y2f = y2.reshape(M, cpo)
    else:
        # TODO(synk): Wo % 8 != 0 corner case -- BN1+ReLU in plain JAX + im2col conv2.
        scale1, bias1 = _bn_affine(st1, g1p, b1p, 1.0 / M)
        out1 = jnp.maximum(y1.astype(jnp.float32) * scale1.reshape(1, 1, 1, -1)
                           + bias1.reshape(1, 1, 1, -1), 0.0)
        p2, _ = im2col(out1.astype(jnp.bfloat16), 3, 1, 1)
        kp2 = _ceil_to(9 * cpo, LANE)
        p2 = _pad_axis(p2, 1, kp2)
        w2f = _pad_axis(w2k.reshape(9 * cpo, cpo), 0, kp2)
        tm2 = _gemm_tile_m(M, kp2, cpo, budget)
        y2p_, st2 = _gemm_stats_call(_pad_rows(p2, _ceil_to(M, tm2)), w2f, tm2, limit)
        y2f = y2p_[:M]

    # ---- shortcut + BN2 (+ BN_sc) + add + ReLU ------------------------------- #
    if proj is not None:
        ws, gs, bs = proj
        xs = x[:, ::stride, ::stride, :].reshape(M, cin)           # 1x1 conv input
        xs = _pad_axis(xs, 1, cpi).astype(jnp.bfloat16)
        wsk = _pad_axis(_pad_axis(ws.reshape(cin, cout), 0, cpi), 1, cpo)
        wsk = wsk.astype(jnp.bfloat16)
        tms = _gemm_tile_m(M, cpi, cpo, budget)
        ysc, stsc = _gemm_stats_call(_pad_rows(xs, _ceil_to(M, tms)), wsk, tms, limit)
        ysc = ysc[:M]
        gsp, bsp = _pad_axis(gs, 1, cpo), _pad_axis(bs, 1, cpo)
        tile_d, md = _row_tile(M, cpo * (2 + 2 + 4), budget)
        out = _bn_proj_add_relu(_pad_rows(y2f, md), st2, g2p, b2p,
                                _pad_rows(ysc, md), stsc, gsp, bsp, M, tile_d, limit)
    else:
        res = _pad_axis(x.reshape(M, cin), 1, cpi)                 # f32 residual
        tile_d, md = _row_tile(M, cpo * (2 + 4 + 4), budget)
        out = _bn_id_add_relu(_pad_rows(y2f, md), st2, g2p, b2p,
                              _pad_rows(res, md), M, tile_d, limit)

    out = out[:M, :cout].reshape(N, Ho, Wo, cout)
    return jnp.transpose(out, (0, 3, 1, 2))                        # -> NCHW


# --------------------------- pure-JAX reference ------------------------------ #

def reference_forward(x_nchw, params, stride):
    x = jnp.transpose(x_nchw, (0, 2, 3, 1)).astype(jnp.float32)

    def conv(x, w, s, pad):
        return jax.lax.conv_general_dilated(
            x, w, (s, s), ((pad, pad), (pad, pad)),
            dimension_numbers=("NHWC", "HWIO", "NHWC"))

    def bn(x, g, b):
        m = jnp.mean(x, axis=(0, 1, 2))
        v = jnp.mean(jnp.square(x - m), axis=(0, 1, 2))
        return (x - m) * jax.lax.rsqrt(v + EPS) * g.reshape(-1) + b.reshape(-1)

    out = jax.nn.relu(bn(conv(x, params["w1"], stride, 1), params["g1"], params["b1"]))
    out = bn(conv(out, params["w2"], 1, 1), params["g2"], params["b2"])
    if params.get("proj") is not None:
        ws, gs, bs = params["proj"]
        sc = bn(conv(x, ws, stride, 0), gs, bs)
    else:
        sc = x
    return jnp.transpose(jax.nn.relu(out + sc), (0, 3, 1, 2))


# ----------------------------------- main ------------------------------------ #

def make_params(key, cin, cout, with_proj):
    ks = jax.random.split(key, 9)
    p = dict(
        w1=0.2 * jax.random.normal(ks[0], (3, 3, cin, cout), jnp.float32),
        g1=1.0 + 0.1 * jax.random.normal(ks[1], (1, cout), jnp.float32),
        b1=0.1 * jax.random.normal(ks[2], (1, cout), jnp.float32),
        w2=0.2 * jax.random.normal(ks[3], (3, 3, cout, cout), jnp.float32),
        g2=1.0 + 0.1 * jax.random.normal(ks[4], (1, cout), jnp.float32),
        b2=0.1 * jax.random.normal(ks[5], (1, cout), jnp.float32),
        proj=None,
    )
    if with_proj:
        p["proj"] = (0.2 * jax.random.normal(ks[6], (1, 1, cin, cout), jnp.float32),
                     1.0 + 0.1 * jax.random.normal(ks[7], (1, cout), jnp.float32),
                     0.1 * jax.random.normal(ks[8], (1, cout), jnp.float32))
    return p


if __name__ == "__main__":
    key = jax.random.PRNGKey(0)
    kx, kp1, kp2 = jax.random.split(key, 3)

    # bf16 MXU operands / bf16 conv intermediates (f32 accumulation & BN math).
    ATOL = RTOL = 3e-2
    fwd = jax.jit(residual_block_forward, static_argnums=2)

    # Case 1: in_channels != out_channels, stride != 1  -> projection shortcut
    N, Cin, H, W, Cout, stride = 2, 4, 16, 16, 8, 2
    x = jax.random.normal(kx, (N, Cin, H, W), jnp.float32)
    params = make_params(kp1, Cin, Cout, with_proj=True)
    out = jax.block_until_ready(fwd(x, params, stride))
    ref = jax.block_until_ready(reference_forward(x, params, stride))
    assert out.shape == (N, Cout, H // stride, W // stride), out.shape
    err = float(jnp.max(jnp.abs(out - ref)))
    assert jnp.allclose(out, ref, atol=ATOL, rtol=RTOL), err

    # Case 2: same channels, stride 1 -> identity shortcut
    params_id = make_params(kp2, Cin, Cin, with_proj=False)
    out2 = jax.block_until_ready(fwd(x, params_id, 1))
    ref2 = jax.block_until_ready(reference_forward(x, params_id, 1))
    assert out2.shape == (N, Cin, H, W), out2.shape
    err2 = float(jnp.max(jnp.abs(out2 - ref2)))
    assert jnp.allclose(out2, ref2, atol=ATOL, rtol=RTOL), err2

    print("KERNEL_OK")
</pallas_src>

<mosaic_0001>
module attributes {stable_mosaic.version = 11 : i64} {
  func.func @gemm_stats_kernel(%arg0: i32, %arg1: memref<128x128xbf16, #tpu.memory_space<vmem>>, %arg2: memref<128x128xbf16, #tpu.memory_space<vmem>>, %arg3: memref<128x128xbf16, #tpu.memory_space<vmem>>, %arg4: memref<8x128xf32, #tpu.memory_space<vmem>>) attributes {dimension_semantics = [#tpu.dimension_semantics<parallel>], iteration_bounds = array<i64: 1>, scalar_prefetch = 0 : i64, scratch_operands = 0 : i64, tpu.core_type = #tpu.core_type<tc>, window_params = [{transform_indices = @transform_0, window_bounds = array<i64: 128, 128>}, {pipeline_mode = #tpu.pipeline_mode<synchronous>, transform_indices = @transform_1, window_bounds = array<i64: 128, 128>}, {transform_indices = @transform_2, window_bounds = array<i64: 128, 128>}, {transform_indices = @transform_3, window_bounds = array<i64: 8, 128>}]} {
    %c0 = arith.constant 0 : index
    %c0_0 = arith.constant 0 : index
    %0 = vector.load %arg1[%c0, %c0_0] : memref<128x128xbf16, #tpu.memory_space<vmem>>, vector<128x128xbf16>
    %c0_1 = arith.constant 0 : index
    %c0_2 = arith.constant 0 : index
    %1 = vector.load %arg2[%c0_1, %c0_2] : memref<128x128xbf16, #tpu.memory_space<vmem>>, vector<128x128xbf16>
    %cst = arith.constant dense<0.000000e+00> : vector<128x128xf32>
    %2 = tpu.matmul %0, %1, %cst {dimension_numbers = #tpu.dot_dimension_numbers<[1], [0], [0], [1], [0, 0, 1, 1], [], []>} : vector<128x128xbf16>, vector<128x128xbf16>, vector<128x128xf32> -> vector<128x128xf32>
    %3 = arith.truncf %2 : vector<128x128xf32> to vector<128x128xbf16>
    %c0_3 = arith.constant 0 : index
    %c0_4 = arith.constant 0 : index
    %4 = vector.load %arg3[%c0_3, %c0_4] : memref<128x128xbf16, #tpu.memory_space<vmem>>, vector<128x128xbf16>
    tpu.vector_store %arg3[%c0_3, %c0_4], %3 {strides = array<i32>} : memref<128x128xbf16, #tpu.memory_space<vmem>>, vector<128x128xbf16>,
    %cst_5 = arith.constant 0.000000e+00 : f32
    %5 = vector.broadcast %cst_5 : f32 to vector<8x128xf32>
    %c0_6 = arith.constant 0 : index
    %c0_7 = arith.constant 0 : index
    %6 = vector.load %arg4[%c0_6, %c0_7] : memref<8x128xf32, #tpu.memory_space<vmem>>, vector<8x128xf32>
    tpu.vector_store %arg4[%c0_6, %c0_7], %5 {strides = array<i32>} : memref<8x128xf32, #tpu.memory_space<vmem>>, vector<8x128xf32>,
    %cst_8 = arith.constant dense<0.000000e+00> : vector<128xf32>
    %7 = vector.multi_reduction <add>, %2, %cst_8 [0] : vector<128x128xf32> to vector<128xf32>
    %8 = vector.shape_cast %7 : vector<128xf32> to vector<1x128xf32>
    %c0_9 = arith.constant 0 : index
    %c0_10 = arith.constant 0 : index
    %9 = vector.load %arg4[%c0_9, %c0_10] : memref<8x128xf32, #tpu.memory_space<vmem>>, vector<1x128xf32>
    tpu.vector_store %arg4[%c0_9, %c0_10], %8 {strides = array<i32>} : memref<8x128xf32, #tpu.memory_space<vmem>>, vector<1x128xf32>,
    %10 = arith.mulf %2, %2 : vector<128x128xf32>
    %cst_11 = arith.constant dense<0.000000e+00> : vector<128xf32>
    %11 = vector.multi_reduction <add>, %10, %cst_11 [0] : vector<128x128xf32> to vector<128xf32>
    %12 = vector.shape_cast %11 : vector<128xf32> to vector<1x128xf32>
    %c1 = arith.constant 1 : index
    %c0_12 = arith.constant 0 : index
    %13 = vector.load %arg4[%c1, %c0_12] : memref<8x128xf32, #tpu.memory_space<vmem>>, vector<1x128xf32>
    tpu.vector_store %arg4[%c1, %c0_12], %12 {strides = array<i32>} : memref<8x128xf32, #tpu.memory_space<vmem>>, vector<1x128xf32>,
    return
  }
  func.func @transform_0(%arg0: i32) -> (i32, i32) {
    %c0_i32 = arith.constant 0 : i32
    %c0_i32_0 = arith.constant 0 : i32
    return %arg0, %c0_i32 : i32, i32
  }
  func.func @transform_1(%arg0: i32) -> (i32, i32) {
    %c0_i32 = arith.constant 0 : i32
    %c0_i32_0 = arith.constant 0 : i32
    %c0_i32_1 = arith.constant 0 : i32
    return %c0_i32, %c0_i32_0 : i32, i32
  }
  func.func @transform_2(%arg0: i32) -> (i32, i32) {
    %c0_i32 = arith.constant 0 : i32
    %c0_i32_0 = arith.constant 0 : i32
    return %arg0, %c0_i32 : i32, i32
  }
  func.func @transform_3(%arg0: i32) -> (i32, i32) {
    %c0_i32 = arith.constant 0 : i32
    %c0_i32_0 = arith.constant 0 : i32
    return %arg0, %c0_i32 : i32, i32
  }
}

module attributes {stable_mosaic.version = 11 : i64} {
  func.func @bn_relu_conv3x3_stats_kernel(%arg0: i32, %arg1: memref<1x10x10x128xbf16, #tpu.memory_space<vmem>>, %arg2: memref<1x10x10x1xf32, #tpu.memory_space<vmem>>, %arg3: memref<8x128xf32, #tpu.memory_space<vmem>>, %arg4: memref<1x128xf32, #tpu.memory_space<vmem>>, %arg5: memref<1x128xf32, #tpu.memory_space<vmem>>, %arg6: memref<9x128x128xbf16, #tpu.memory_space<vmem>>, %arg7: memref<1x8x8x128xbf16, #tpu.memory_space<vmem>>, %arg8: memref<8x128xf32, #tpu.memory_space<vmem>>, %arg9: memref<10x10x128xbf16, #tpu.memory_space<vmem>>) attributes {dimension_semantics = [#tpu.dimension_semantics<parallel>], iteration_bounds = array<i64: 2>, scalar_prefetch = 0 : i64, scratch_operands = 1 : i64, tpu.core_type = #tpu.core_type<tc>, window_params = [{transform_indices = @transform_0, window_bounds = array<i64: 1, 10, 10, 128>}, {pipeline_mode = #tpu.pipeline_mode<synchronous>, transform_indices = @transform_1, window_bounds = array<i64: 1, 10, 10, 1>}, {pipeline_mode = #tpu.pipeline_mode<synchronous>, transform_indices = @transform_2, window_bounds = array<i64: 8, 128>}, {pipeline_mode = #tpu.pipeline_mode<synchronous>, transform_indices = @transform_3, window_bounds = array<i64: 1, 128>}, {pipeline_mode = #tpu.pipeline_mode<synchronous>, transform_indices = @transform_4, window_bounds = array<i64: 1, 128>}, {pipeline_mode = #tpu.pipeline_mode<synchronous>, transform_indices = @transform_5, window_bounds = array<i64: 9, 128, 128>}, {transform_indices = @transform_6, window_bounds = array<i64: 1, 8, 8, 128>}, {transform_indices = @transform_7, window_bounds = array<i64: 8, 128>}]} {
    %c0 = arith.constant 0 : index
    %c0_0 = arith.constant 0 : index
    %0 = vector.load %arg3[%c0, %c0_0] : memref<8x128xf32, #tpu.memory_space<vmem>>, vector<8x128xf32>
    %c0_1 = arith.constant 0 : index
    %c0_2 = arith.constant 0 : index
    %1 = vector.load %arg4[%c0_1, %c0_2] : memref<1x128xf32, #tpu.memory_space<vmem>>, vector<1x128xf32>
    %c0_3 = arith.constant 0 : index
    %c0_4 = arith.constant 0 : index
    %2 = vector.load %arg5[%c0_3, %c0_4] : memref<1x128xf32, #tpu.memory_space<vmem>>, vector<1x128xf32>
    %3 = vector.extract_strided_slice %0 {offsets = [0, 0], sizes = [1, 128], strides = [1, 1]} : vector<8x128xf32> to vector<1x128xf32>
    %cst = arith.constant 7.812500e-03 : f32
    %4 = vector.broadcast %cst : f32 to vector<1x128xf32>
    %5 = arith.mulf %3, %4 : vector<1x128xf32>
    %6 = vector.extract_strided_slice %0 {offsets = [1, 0], sizes = [1, 128], strides = [1, 1]} : vector<8x128xf32> to vector<1x128xf32>
    %cst_5 = arith.constant 7.812500e-03 : f32
    %7 = vector.broadcast %cst_5 : f32 to vector<1x128xf32>
    %8 = arith.mulf %6, %7 : vector<1x128xf32>
    %9 = arith.mulf %5, %5 : vector<1x128xf32>
    %10 = arith.subf %8, %9 : vector<1x128xf32>
    %cst_6 = arith.constant 9.99999974E-6 : f32
    %11 = vector.broadcast %cst_6 : f32 to vector<1x128xf32>
    %12 = arith.addf %10, %11 : vector<1x128xf32>
    %13 = math.rsqrt %12 : vector<1x128xf32>
    %14 = arith.mulf %1, %13 : vector<1x128xf32>
    %15 = arith.mulf %5, %14 : vector<1x128xf32>
    %16 = arith.subf %2, %15 : vector<1x128xf32>
    %c0_7 = arith.constant 0 : index
    %c0_8 = arith.constant 0 : index
    %c0_9 = arith.constant 0 : index
    %c0_10 = arith.constant 0 : index
    %17 = vector.load %arg1[%c0_7, %c0_8, %c0_9, %c0_10] : memref<1x10x10x128xbf16, #tpu.memory_space<vmem>>, vector<1x10x10x128xbf16>
    %18 = vector.shape_cast %17 : vector<1x10x10x128xbf16> to vector<10x10x128xbf16>
    %19 = arith.extf %18 : vector<10x10x128xbf16> to vector<10x10x128xf32>
    %20 = vector.shape_cast %14 : vector<1x128xf32> to vector<1x1x128xf32>
    %21 = vector.broadcast %20 : vector<1x1x128xf32> to vector<10x10x128xf32>
    %22 = arith.mulf %19, %21 : vector<10x10x128xf32>
    %23 = vector.shape_cast %16 : vector<1x128xf32> to vector<1x1x128xf32>
    %24 = vector.broadcast %23 : vector<1x1x128xf32> to vector<10x10x128xf32>
    %25 = arith.addf %22, %24 : vector<10x10x128xf32>
    %cst_11 = arith.constant 0.000000e+00 : f32
    %26 = vector.broadcast %cst_11 : f32 to vector<10x10x128xf32>
    %27 = arith.maximumf %25, %26 : vector<10x10x128xf32>
    %c0_12 = arith.constant 0 : index
    %c0_13 = arith.constant 0 : index
    %c0_14 = arith.constant 0 : index
    %c0_15 = arith.constant 0 : index
    %28 = vector.load %arg2[%c0_12, %c0_13, %c0_14, %c0_15] : memref<1x10x10x1xf32, #tpu.memory_space<vmem>>, vector<1x10x10x1xf32>
    %29 = vector.shape_cast %28 : vector<1x10x10x1xf32> to vector<10x10x1xf32>
    %30 = vector.broadcast %29 : vector<10x10x1xf32> to vector<10x10x128xf32>
    %31 = arith.mulf %27, %30 : vector<10x10x128xf32>
    %32 = arith.truncf %31 : vector<10x10x128xf32> to vector<10x10x128xbf16>
    %c0_16 = arith.constant 0 : index
    %c0_17 = arith.constant 0 : index
    %c0_18 = arith.constant 0 : index
    %33 = vector.load %arg9[%c0_16, %c0_17, %c0_18] : memref<10x10x128xbf16, #tpu.memory_space<vmem>>, vector<10x10x128xbf16>
    tpu.vector_store %arg9[%c0_16, %c0_17, %c0_18], %32 {strides = array<i32>} : memref<10x10x128xbf16, #tpu.memory_space<vmem>>, vector<10x10x128xbf16>,
    %cst_19 = arith.constant 0.000000e+00 : f32
    %34 = vector.broadcast %cst_19 : f32 to vector<64x128xf32>
    %c0_20 = arith.constant 0 : index
    %c0_21 = arith.constant 0 : index
    %c0_22 = arith.constant 0 : index
    %35 = vector.load %arg9[%c0_20, %c0_21, %c0_22] : memref<10x10x128xbf16, #tpu.memory_space<vmem>>, vector<8x8x128xbf16>
    %36 = vector.shape_cast %35 : vector<8x8x128xbf16> to vector<64x128xbf16>
    %c0_23 = arith.constant 0 : index
    %c0_24 = arith.constant 0 : index
    %c0_25 = arith.constant 0 : index
    %37 = vector.load %arg6[%c0_23, %c0_24, %c0_25] : memref<9x128x128xbf16, #tpu.memory_space<vmem>>, vector<1x128x128xbf16>
    %38 = vector.shape_cast %37 : vector<1x128x128xbf16> to vector<128x128xbf16>
    %cst_26 = arith.constant dense<0.000000e+00> : vector<64x128xf32>
    %39 = tpu.matmul %36, %38, %cst_26 {dimension_numbers = #tpu.dot_dimension_numbers<[1], [0], [0], [1], [0, 0, 1, 1], [], []>} : vector<64x128xbf16>, vector<128x128xbf16>, vector<64x128xf32> -> vector<64x128xf32>
    %40 = arith.addf %34, %39 : vector<64x128xf32>
    %c0_27 = arith.constant 0 : index
    %c1 = arith.constant 1 : index
    %c0_28 = arith.constant 0 : index
    %41 = vector.load %arg9[%c0_27, %c1, %c0_28] : memref<10x10x128xbf16, #tpu.memory_space<vmem>>, vector<8x8x128xbf16>
    %42 = vector.shape_cast %41 : vector<8x8x128xbf16> to vector<64x128xbf16>
    %c1_29 = arith.constant 1 : index
    %c0_30 = arith.constant 0 : index
    %c0_31 = arith.constant 0 : index
    %43 = vector.load %arg6[%c1_29, %c0_30, %c0_31] : memref<9x128x128xbf16, #tpu.memory_space<vmem>>, vector<1x128x128xbf16>
    %44 = vector.shape_cast %43 : vector<1x128x128xbf16> to vector<128x128xbf16>
    %cst_32 = arith.constant dense<0.000000e+00> : vector<64x128xf32>
    %45 = tpu.matmul %42, %44, %cst_32 {dimension_numbers = #tpu.dot_dimension_numbers<[1], [0], [0], [1], [0, 0, 1, 1], [], []>} : vector<64x128xbf16>, vector<128x128xbf16>, vector<64x128xf32> -> vector<64x128xf32>
    %46 = arith.addf %40, %45 : vector<64x128xf32>
    %c0_33 = arith.constant 0 : index
    %c2 = arith.constant 2 : index
    %c0_34 = arith.constant 0 : index
    %47 = vector.load %arg9[%c0_33, %c2, %c0_34] : memref<10x10x128xbf16, #tpu.memory_space<vmem>>, vector<8x8x128xbf16>
    %48 = vector.shape_cast %47 : vector<8x8x128xbf16> to vector<64x128xbf16>
    %c2_35 = arith.constant 2 : index
    %c0_36 = arith.constant 0 : index
    %c0_37 = arith.constant 0 : index
    %49 = vector.load %arg6[%c2_35, %c0_36, %c0_37] : memref<9x128x128xbf16, #tpu.memory_space<vmem>>, vector<1x128x128xbf16>
    %50 = vector.shape_cast %49 : vector<1x128x128xbf16> to vector<128x128xbf16>
    %cst_38 = arith.constant dense<0.000000e+00> : vector<64x128xf32>
    %51 = tpu.matmul %48, %50, %cst_38 {dimension_numbers = #tpu.dot_dimension_numbers<[1], [0], [0], [1], [0, 0, 1, 1], [], []>} : vector<64x128xbf16>, vector<128x128xbf16>, vector<64x128xf32> -> vector<64x128xf32>
    %52 = arith.addf %46, %51 : vector<64x128xf32>
    %c1_39 = arith.constant 1 : index
    %c0_40 = arith.constant 0 : index
    %c0_41 = arith.constant 0 : index
    %53 = vector.load %arg9[%c1_39, %c0_40, %c0_41] : memref<10x10x128xbf16, #tpu.memory_space<vmem>>, vector<8x8x128xbf16>
    %54 = vector.shape_cast %53 : vector<8x8x128xbf16> to vector<64x128xbf16>
    %c3 = arith.constant 3 : index
    %c0_42 = arith.constant 0 : index
    %c0_43 = arith.constant 0 : index
    %55 = vector.load %arg6[%c3, %c0_42, %c0_43] : memref<9x128x128xbf16, #tpu.memory_space<vmem>>, vector<1x128x128xbf16>
    %56 = vector.shape_cast %55 : vector<1x128x128xbf16> to vector<128x128xbf16>
    %cst_44 = arith.constant dense<0.000000e+00> : vector<64x128xf32>
    %57 = tpu.matmul %54, %56, %cst_44 {dimension_numbers = #tpu.dot_dimension_numbers<[1], [0], [0], [1], [0, 0, 1, 1], [], []>} : vector<64x128xbf16>, vector<128x128xbf16>, vector<64x128xf32> -> vector<64x128xf32>
    %58 = arith.addf %52, %57 : vector<64x128xf32>
    %c1_45 = arith.constant 1 : index
    %c1_46 = arith.constant 1 : index
    %c0_47 = arith.constant 0 : index
    %59 = vector.load %arg9[%c1_45, %c1_46, %c0_47] : memref<10x10x128xbf16, #tpu.memory_space<vmem>>, vector<8x8x128xbf16>
    %60 = vector.shape_cast %59 : vector<8x8x128xbf16> to vector<64x128xbf16>
    %c4 = arith.constant 4 : index
    %c0_48 = arith.constant 0 : index
    %c0_49 = arith.constant 0 : index
    %61 = vector.load %arg6[%c4, %c0_48, %c0_49] : memref<9x128x128xbf16, #tpu.memory_space<vmem>>, vector<1x128x128xbf16>
    %62 = vector.shape_cast %61 : vector<1x128x128xbf16> to vector<128x128xbf16>
    %cst_50 = arith.constant dense<0.000000e+00> : vector<64x128xf32>
    %63 = tpu.matmul %60, %62, %cst_50 {dimension_numbers = #tpu.dot_dimension_numbers<[1], [0], [0], [1], [0, 0, 1, 1], [], []>} : vector<64x128xbf16>, vector<128x128xbf16>, vector<64x128xf32> -> vector<64x128xf32>
    %64 = arith.addf %58, %63 : vector<64x128xf32>
    %c1_51 = arith.constant 1 : index
    %c2_52 = arith.constant 2 : index
    %c0_53 = arith.constant 0 : index
    %65 = vector.load %arg9[%c1_51, %c2_52, %c0_53] : memref<10x10x128xbf16, #tpu.memory_space<vmem>>, vector<8x8x128xbf16>
    %66 = vector.shape_cast %65 : vector<8x8x128xbf16> to vector<64x128xbf16>
    %c5 = arith.constant 5 : index
    %c0_54 = arith.constant 0 : index
    %c0_55 = arith.constant 0 : index
    %67 = vector.load %arg6[%c5, %c0_54, %c0_55] : memref<9x128x128xbf16, #tpu.memory_space<vmem>>, vector<1x128x128xbf16>
    %68 = vector.shape_cast %67 : vector<1x128x128xbf16> to vector<128x128xbf16>
    %cst_56 = arith.constant dense<0.000000e+00> : vector<64x128xf32>
    %69 = tpu.matmul %66, %68, %cst_56 {dimension_numbers = #tpu.dot_dimension_numbers<[1], [0], [0], [1], [0, 0, 1, 1], [], []>} : vector<64x128xbf16>, vector<128x128xbf16>, vector<64x128xf32> -> vector<64x128xf32>
    %70 = arith.addf %64, %69 : vector<64x128xf32>
    %c2_57 = arith.constant 2 : index
    %c0_58 = arith.constant 0 : index
    %c0_59 = arith.constant 0 : index
    %71 = vector.load %arg9[%c2_57, %c0_58, %c0_59] : memref<10x10x128xbf16, #tpu.memory_space<vmem>>, vector<8x8x128xbf16>
    %72 = vector.shape_cast %71 : vector<8x8x128xbf16> to vector<64x128xbf16>
    %c6 = arith.constant 6 : index
    %c0_60 = arith.constant 0 : index
    %c0_61 = arith.constant 0 : index
    %73 = vector.load %arg6[%c6, %c0_60, %c0_61] : memref<9x128x128xbf16, #tpu.memory_space<vmem>>, vector<1x128x128xbf16>
    %74 = vector.shape_cast %73 : vector<1x128x128xbf16> to vector<128x128xbf16>
    %cst_62 = arith.constant dense<0.000000e+00> : vector<64x128xf32>
    %75 = tpu.matmul %72, %74, %cst_62 {dimension_numbers = #tpu.dot_dimension_numbers<[1], [0], [0], [1], [0, 0, 1, 1], [], []>} : vector<64x128xbf16>, vector<128x128xbf16>, vector<64x128xf32> -> vector<64x128xf32>
    %76 = arith.addf %70, %75 : vector<64x128xf32>
    %c2_63 = arith.constant 2 : index
    %c1_64 = arith.constant 1 : index
    %c0_65 = arith.constant 0 : index
    %77 = vector.load %arg9[%c2_63, %c1_64, %c0_65] : memref<10x10x128xbf16, #tpu.memory_space<vmem>>, vector<8x8x128xbf16>
    %78 = vector.shape_cast %77 : vector<8x8x128xbf16> to vector<64x128xbf16>
    %c7 = arith.constant 7 : index
    %c0_66 = arith.constant 0 : index
    %c0_67 = arith.constant 0 : index
    %79 = vector.load %arg6[%c7, %c0_66, %c0_67] : memref<9x128x128xbf16, #tpu.memory_space<vmem>>, vector<1x128x128xbf16>
    %80 = vector.shape_cast %79 : vector<1x128x128xbf16> to vector<128x128xbf16>
    %cst_68 = arith.constant dense<0.000000e+00> : vector<64x128xf32>
    %81 = tpu.matmul %78, %80, %cst_68 {dimension_numbers = #tpu.dot_dimension_numbers<[1], [0], [0], [1], [0, 0, 1, 1], [], []>} : vector<64x128xbf16>, vector<128x128xbf16>, vector<64x128xf32> -> vector<64x128xf32>
    %82 = arith.addf %76, %81 : vector<64x128xf32>
    %c2_69 = arith.constant 2 : index
    %c2_70 = arith.constant 2 : index
    %c0_71 = arith.constant 0 : index
    %83 = vector.load %arg9[%c2_69, %c2_70, %c0_71] : memref<10x10x128xbf16, #tpu.memory_space<vmem>>, vector<8x8x128xbf16>
    %84 = vector.shape_cast %83 : vector<8x8x128xbf16> to vector<64x128xbf16>
    %c8 = arith.constant 8 : index
    %c0_72 = arith.constant 0 : index
    %c0_73 = arith.constant 0 : index
    %85 = vector.load %arg6[%c8, %c0_72, %c0_73] : memref<9x128x128xbf16, #tpu.memory_space<vmem>>, vector<1x128x128xbf16>
    %86 = vector.shape_cast %85 : vector<1x128x128xbf16> to vector<128x128xbf16>
    %cst_74 = arith.constant dense<0.000000e+00> : vector<64x128xf32>
    %87 = tpu.matmul %84, %86, %cst_74 {dimension_numbers = #tpu.dot_dimension_numbers<[1], [0], [0], [1], [0, 0, 1, 1], [], []>} : vector<64x128xbf16>, vector<128x128xbf16>, vector<64x128xf32> -> vector<64x128xf32>
    %88 = arith.addf %82, %87 : vector<64x128xf32>
    %89 = vector.shape_cast %88 : vector<64x128xf32> to vector<1x8x8x128xf32>
    %90 = arith.truncf %89 : vector<1x8x8x128xf32> to vector<1x8x8x128xbf16>
    %c0_75 = arith.constant 0 : index
    %c0_76 = arith.constant 0 : index
    %c0_77 = arith.constant 0 : index
    %c0_78 = arith.constant 0 : index
    %91 = vector.load %arg7[%c0_75, %c0_76, %c0_77, %c0_78] : memref<1x8x8x128xbf16, #tpu.memory_space<vmem>>, vector<1x8x8x128xbf16>
    tpu.vector_store %arg7[%c0_75, %c0_76, %c0_77, %c0_78], %90 {strides = array<i32>} : memref<1x8x8x128xbf16, #tpu.memory_space<vmem>>, vector<1x8x8x128xbf16>,
    %cst_79 = arith.constant 0.000000e+00 : f32
    %92 = vector.broadcast %cst_79 : f32 to vector<8x128xf32>
    %c0_80 = arith.constant 0 : index
    %c0_81 = arith.constant 0 : index
    %93 = vector.load %arg8[%c0_80, %c0_81] : memref<8x128xf32, #tpu.memory_space<vmem>>, vector<8x128xf32>
    tpu.vector_store %arg8[%c0_80, %c0_81], %92 {strides = array<i32>} : memref<8x128xf32, #tpu.memory_space<vmem>>, vector<8x128xf32>,
    %cst_82 = arith.constant dense<0.000000e+00> : vector<128xf32>
    %94 = vector.multi_reduction <add>, %88, %cst_82 [0] : vector<64x128xf32> to vector<128xf32>
    %95 = vector.shape_cast %94 : vector<128xf32> to vector<1x128xf32>
    %c0_83 = arith.constant 0 : index
    %c0_84 = arith.constant 0 : index
    %96 = vector.load %arg8[%c0_83, %c0_84] : memref<8x128xf32, #tpu.memory_space<vmem>>, vector<1x128xf32>
    tpu.vector_store %arg8[%c0_83, %c0_84], %95 {strides = array<i32>} : memref<8x128xf32, #tpu.memory_space<vmem>>, vector<1x128xf32>,
    %97 = arith.mulf %88, %88 : vector<64x128xf32>
    %cst_85 = arith.constant dense<0.000000e+00> : vector<128xf32>
    %98 = vector.multi_reduction <add>, %97, %cst_85 [0] : vector<64x128xf32> to vector<128xf32>
    %99 = vector.shape_cast %98 : vector<128xf32> to vector<1x128xf32>
    %c1_86 = arith.constant 1 : index
    %c0_87 = arith.constant 0 : index
    %100 = vector.load %arg8[%c1_86, %c0_87] : memref<8x128xf32, #tpu.memory_space<vmem>>, vector<1x128xf32>
    tpu.vector_store %arg8[%c1_86, %c0_87], %99 {strides = array<i32>} : memref<8x128xf32, #tpu.memory_space<vmem>>, vector<1x128xf32>,
    return
  }
  func.func @transform_0(%arg0: i32) -> (i32, i32, i32, i32) {
    %c0_i32 = arith.constant 0 : i32
    %c0_i32_0 = arith.constant 0 : i32
    %c0_i32_1 = arith.constant 0 : i32
    %c0_i32_2 = arith.constant 0 : i32
    return %arg0, %c0_i32, %c0_i32_0, %c0_i32_1 : i32, i32, i32, i32
  }
  func.func @transform_1(%arg0: i32) -> (i32, i32, i32, i32) {
    %c0_i32 = arith.constant 0 : i32
    %c0_i32_0 = arith.constant 0 : i32
    %c0_i32_1 = arith.constant 0 : i32
    %c0_i32_2 = arith.constant 0 : i32
    %c0_i32_3 = arith.constant 0 : i32
    return %c0_i32, %c0_i32_0, %c0_i32_1, %c0_i32_2 : i32, i32, i32, i32
  }
  func.func @transform_2(%arg0: i32) -> (i32, i32) {
    %c0_i32 = arith.constant 0 : i32
    %c0_i32_0 = arith.constant 0 : i32
    %c0_i32_1 = arith.constant 0 : i32
    return %c0_i32, %c0_i32_0 : i32, i32
  }
  func.func @transform_3(%arg0: i32) -> (i32, i32) {
    %c0_i32 = arith.constant 0 : i32
    %c0_i32_0 = arith.constant 0 : i32
    %c0_i32_1 = arith.constant 0 : i32
    return %c0_i32, %c0_i32_0 : i32, i32
  }
  func.func @transform_4(%arg0: i32) -> (i32, i32) {
    %c0_i32 = arith.constant 0 : i32
    %c0_i32_0 = arith.constant 0 : i32
    %c0_i32_1 = arith.constant 0 : i32
    return %c0_i32, %c0_i32_0 : i32, i32
  }
  func.func @transform_5(%arg0: i32) -> (i32, i32, i32) {
    %c0_i32 = arith.constant 0 : i32
    %c0_i32_0 = arith.constant 0 : i32
    %c0_i32_1 = arith.constant 0 : i32
    %c0_i32_2 = arith.constant 0 : i32
    return %c0_i32, %c0_i32_0, %c0_i32_1 : i32, i32, i32
  }
  func.func @transform_6(%arg0: i32) -> (i32, i32, i32, i32) {
    %c0_i32 = arith.constant 0 : i32
    %c0_i32_0 = arith.constant 0 : i32
    %c0_i32_1 = arith.constant 0 : i32
    %c0_i32_2 = arith.constant 0 : i32
    return %arg0, %c0_i32, %c0_i32_0, %c0_i32_1 : i32, i32, i32, i32
  }
  func.func @transform_7(%arg0: i32) -> (i32, i32) {
    %c0_i32 = arith.constant 0 : i32
    %c0_i32_0 = arith.constant 0 : i32
    return %arg0, %c0_i32 : i32, i32
  }
}

module attributes {stable_mosaic.version = 11 : i64} {
  func.func @bn_proj_add_relu_kernel(%arg0: i32, %arg1: memref<128x128xbf16, #tpu.memory_space<vmem>>, %arg2: memref<8x128xf32, #tpu.memory_space<vmem>>, %arg3: memref<1x128xf32, #tpu.memory_space<vmem>>, %arg4: memref<1x128xf32, #tpu.memory_space<vmem>>, %arg5: memref<128x128xbf16, #tpu.memory_space<vmem>>, %arg6: memref<8x128xf32, #tpu.memory_space<vmem>>, %arg7: memref<1x128xf32, #tpu.memory_space<vmem>>, %arg8: memref<1x128xf32, #tpu.memory_space<vmem>>, %arg9: memref<128x128xf32, #tpu.memory_space<vmem>>) attributes {dimension_semantics = [#tpu.dimension_semantics<parallel>], iteration_bounds = array<i64: 1>, scalar_prefetch = 0 : i64, scratch_operands = 0 : i64, tpu.core_type = #tpu.core_type<tc>, window_params = [{transform_indices = @transform_0, window_bounds = array<i64: 128, 128>}, {pipeline_mode = #tpu.pipeline_mode<synchronous>, transform_indices = @transform_1, window_bounds = array<i64: 8, 128>}, {pipeline_mode = #tpu.pipeline_mode<synchronous>, transform_indices = @transform_2, window_bounds = array<i64: 1, 128>}, {pipeline_mode = #tpu.pipeline_mode<synchronous>, transform_indices = @transform_3, window_bounds = array<i64: 1, 128>}, {transform_indices = @transform_4, window_bounds = array<i64: 128, 128>}, {pipeline_mode = #tpu.pipeline_mode<synchronous>, transform_indices = @transform_5, window_bounds = array<i64: 8, 128>}, {pipeline_mode = #tpu.pipeline_mode<synchronous>, transform_indices = @transform_6, window_bounds = array<i64: 1, 128>}, {pipeline_mode = #tpu.pipeline_mode<synchronous>, transform_indices = @transform_7, window_bounds = array<i64: 1, 128>}, {transform_indices = @transform_8, window_bounds = array<i64: 128, 128>}]} {
    %c0 = arith.constant 0 : index
    %c0_0 = arith.constant 0 : index
    %0 = vector.load %arg2[%c0, %c0_0] : memref<8x128xf32, #tpu.memory_space<vmem>>, vector<8x128xf32>
    %c0_1 = arith.constant 0 : index
    %c0_2 = arith.constant 0 : index
    %1 = vector.load %arg3[%c0_1, %c0_2] : memref<1x128xf32, #tpu.memory_space<vmem>>, vector<1x128xf32>
    %c0_3 = arith.constant 0 : index
    %c0_4 = arith.constant 0 : index
    %2 = vector.load %arg4[%c0_3, %c0_4] : memref<1x128xf32, #tpu.memory_space<vmem>>, vector<1x128xf32>
    %3 = vector.extract_strided_slice %0 {offsets = [0, 0], sizes = [1, 128], strides = [1, 1]} : vector<8x128xf32> to vector<1x128xf32>
    %cst = arith.constant 7.812500e-03 : f32
    %4 = vector.broadcast %cst : f32 to vector<1x128xf32>
    %5 = arith.mulf %3, %4 : vector<1x128xf32>
    %6 = vector.extract_strided_slice %0 {offsets = [1, 0], sizes = [1, 128], strides = [1, 1]} : vector<8x128xf32> to vector<1x128xf32>
    %cst_5 = arith.constant 7.812500e-03 : f32
    %7 = vector.broadcast %cst_5 : f32 to vector<1x128xf32>
    %8 = arith.mulf %6, %7 : vector<1x128xf32>
    %9 = arith.mulf %5, %5 : vector<1x128xf32>
    %10 = arith.subf %8, %9 : vector<1x128xf32>
    %cst_6 = arith.constant 9.99999974E-6 : f32
    %11 = vector.broadcast %cst_6 : f32 to vector<1x128xf32>
    %12 = arith.addf %10, %11 : vector<1x128xf32>
    %13 = math.rsqrt %12 : vector<1x128xf32>
    %14 = arith.mulf %1, %13 : vector<1x128xf32>
    %15 = arith.mulf %5, %14 : vector<1x128xf32>
    %16 = arith.subf %2, %15 : vector<1x128xf32>
    %c0_7 = arith.constant 0 : index
    %c0_8 = arith.constant 0 : index
    %17 = vector.load %arg6[%c0_7, %c0_8] : memref<8x128xf32, #tpu.memory_space<vmem>>, vector<8x128xf32>
    %c0_9 = arith.constant 0 : index
    %c0_10 = arith.constant 0 : index
    %18 = vector.load %arg7[%c0_9, %c0_10] : memref<1x128xf32, #tpu.memory_space<vmem>>, vector<1x128xf32>
    %c0_11 = arith.constant 0 : index
    %c0_12 = arith.constant 0 : index
    %19 = vector.load %arg8[%c0_11, %c0_12] : memref<1x128xf32, #tpu.memory_space<vmem>>, vector<1x128xf32>
    %20 = vector.extract_strided_slice %17 {offsets = [0, 0], sizes = [1, 128], strides = [1, 1]} : vector<8x128xf32> to vector<1x128xf32>
    %cst_13 = arith.constant 7.812500e-03 : f32
    %21 = vector.broadcast %cst_13 : f32 to vector<1x128xf32>
    %22 = arith.mulf %20, %21 : vector<1x128xf32>
    %23 = vector.extract_strided_slice %17 {offsets = [1, 0], sizes = [1, 128], strides = [1, 1]} : vector<8x128xf32> to vector<1x128xf32>
    %cst_14 = arith.constant 7.812500e-03 : f32
    %24 = vector.broadcast %cst_14 : f32 to vector<1x128xf32>
    %25 = arith.mulf %23, %24 : vector<1x128xf32>
    %26 = arith.mulf %22, %22 : vector<1x128xf32>
    %27 = arith.subf %25, %26 : vector<1x128xf32>
    %cst_15 = arith.constant 9.99999974E-6 : f32
    %28 = vector.broadcast %cst_15 : f32 to vector<1x128xf32>
    %29 = arith.addf %27, %28 : vector<1x128xf32>
    %30 = math.rsqrt %29 : vector<1x128xf32>
    %31 = arith.mulf %18, %30 : vector<1x128xf32>
    %32 = arith.mulf %22, %31 : vector<1x128xf32>
    %33 = arith.subf %19, %32 : vector<1x128xf32>
    %c0_16 = arith.constant 0 : index
    %c0_17 = arith.constant 0 : index
    %34 = vector.load %arg1[%c0_16, %c0_17] : memref<128x128xbf16, #tpu.memory_space<vmem>>, vector<128x128xbf16>
    %35 = arith.extf %34 : vector<128x128xbf16> to vector<128x128xf32>
    %36 = vector.broadcast %14 : vector<1x128xf32> to vector<128x128xf32>
    %37 = arith.mulf %35, %36 : vector<128x128xf32>
    %38 = vector.broadcast %16 : vector<1x128xf32> to vector<128x128xf32>
    %39 = arith.addf %37, %38 : vector<128x128xf32>
    %c0_18 = arith.constant 0 : index
    %c0_19 = arith.constant 0 : index
    %40 = vector.load %arg5[%c0_18, %c0_19] : memref<128x128xbf16, #tpu.memory_space<vmem>>, vector<128x128xbf16>
    %41 = arith.extf %40 : vector<128x128xbf16> to vector<128x128xf32>
    %42 = vector.broadcast %31 : vector<1x128xf32> to vector<128x128xf32>
    %43 = arith.mulf %41, %42 : vector<128x128xf32>
    %44 = arith.addf %39, %43 : vector<128x128xf32>
    %45 = vector.broadcast %33 : vector<1x128xf32> to vector<128x128xf32>
    %46 = arith.addf %44, %45 : vector<128x128xf32>
    %cst_20 = arith.constant 0.000000e+00 : f32
    %47 = vector.broadcast %cst_20 : f32 to vector<128x128xf32>
    %48 = arith.maximumf %46, %47 : vector<128x128xf32>
    %c0_21 = arith.constant 0 : index
    %c0_22 = arith.constant 0 : index
    %49 = vector.load %arg9[%c0_21, %c0_22] : memref<128x128xf32, #tpu.memory_space<vmem>>, vector<128x128xf32>
    tpu.vector_store %arg9[%c0_21, %c0_22], %48 {strides = array<i32>} : memref<128x128xf32, #tpu.memory_space<vmem>>, vector<128x128xf32>,
    return
  }
  func.func @transform_0(%arg0: i32) -> (i32, i32) {
    %c0_i32 = arith.constant 0 : i32
    %c0_i32_0 = arith.constant 0 : i32
    return %arg0, %c0_i32 : i32, i32
  }
  func.func @transform_1(%arg0: i32) -> (i32, i32) {
    %c0_i32 = arith.constant 0 : i32
    %c0_i32_0 = arith.constant 0 : i32
    %c0_i32_1 = arith.constant 0 : i32
    return %c0_i32, %c0_i32_0 : i32, i32
  }
  func.func @transform_2(%arg0: i32) -> (i32, i32) {
    %c0_i32 = arith.constant 0 : i32
    %c0_i32_0 = arith.constant 0 : i32
    %c0_i32_1 = arith.constant 0 : i32
    return %c0_i32, %c0_i32_0 : i32, i32
  }
  func.func @transform_3(%arg0: i32) -> (i32, i32) {
    %c0_i32 = arith.constant 0 : i32
    %c0_i32_0 = arith.constant 0 : i32
    %c0_i32_1 = arith.constant 0 : i32
    return %c0_i32, %c0_i32_0 : i32, i32
  }
  func.func @transform_4(%arg0: i32) -> (i32, i32) {
    %c0_i32 = arith.constant 0 : i32
    %c0_i32_0 = arith.constant 0 : i32
    return %arg0, %c0_i32 : i32, i32
  }
  func.func @transform_5(%arg0: i32) -> (i32, i32) {
    %c0_i32 = arith.constant 0 : i32
    %c0_i32_0 = arith.constant 0 : i32
    %c0_i32_1 = arith.constant 0 : i32
    return %c0_i32, %c0_i32_0 : i32, i32
  }
  func.func @transform_6(%arg0: i32) -> (i32, i32) {
    %c0_i32 = arith.constant 0 : i32
    %c0_i32_0 = arith.constant 0 : i32
    %c0_i32_1 = arith.constant 0 : i32
    return %c0_i32, %c0_i32_0 : i32, i32
  }
  func.func @transform_7(%arg0: i32) -> (i32, i32) {
    %c0_i32 = arith.constant 0 : i32
    %c0_i32_0 = arith.constant 0 : i32
    %c0_i32_1 = arith.constant 0 : i32
    return %c0_i32, %c0_i32_0 : i32, i32
  }
  func.func @transform_8(%arg0: i32) -> (i32, i32) {
    %c0_i32 = arith.constant 0 : i32
    %c0_i32_0 = arith.constant 0 : i32
    return %arg0, %c0_i32 : i32, i32
  }
}

</mosaic_0001>

<bundles_post_ra>
// kernel: residual_block_forward.4
= control target key start
LH: loop header
LB: loop body
LE: loop exit
PB: predicated region body
PF: predicated region fallthrough
CT: control target
= control target key end

     0   :  { %v564_v16 = vmov 0.0   ;;  %s666_s1 = inlined_call_operand.vmem [shape: bf16[128,128], index: 1, kind: input, shape index: {}]   ;;  %s667_s0 = inlined_call_operand.vmem [shape: bf16[128,128], index: 0, kind: input, shape index: {}]   ;;  %s668_s3 = inlined_call_operand.vmem [shape: f32[8,128], index: 3, kind: output, shape index: {1}]   ;;  %s669_s2 = inlined_call_operand.vmem [shape: bf16[128,128], index: 2, kind: output, shape index: {0}]  }
   0x1   :  { %v548_v0 = vld [vmem:[%s666_s1] sm:$0xff]   ;;  %v549_v1 = vld [vmem:[%s666_s1 + $0x8] sm:$0xff]   ;;  %v550_v2 = vld [vmem:[%s666_s1 + $0x10] sm:$0xff]   ;;  %319 = vst [vmem:[%s668_s3] sm:$0xff] %v564_v16 }
   0x2   :  { %499 = vmatprep.subr.bf16.mxu0 %v548_v0  ;;  %531 = vmatprep.subr.bf16.mxu1 %v548_v0  ;;  %v551_v3 = vld [vmem:[%s666_s1 + $0x18] sm:$0xff]   ;;  %v556_v4 = vld [vmem:[%s667_s0] sm:$0xff]   ;;  %v553_v7 = vld [vmem:[%s666_s1 + $0x28] sm:$0xff]  }
   0x3   :  { %500 = vmatpush3.bf16.msra.mxu0 %v548_v0  ;;  %539 = vmatpush3.bf16.msra.mxu1 %v548_v0  ;;  %v552_v5 = vld [vmem:[%s666_s1 + $0x20] sm:$0xff]   ;;  %v554_v8 = vld [vmem:[%s666_s1 + $0x30] sm:$0xff]   ;;  %v555_v9 = vld [vmem:[%s666_s1 + $0x38] sm:$0xff]  }
   0x4   :  { %501 = vmatprep.subr.bf16.mxu0 %v549_v1  ;;  %532 = vmatprep.subr.bf16.mxu1 %v549_v1  ;;  %v560_v6 = vld [vmem:[%s667_s0 + $0x20] sm:$0xff]   ;;  %v557_v10 = vld [vmem:[%s667_s0 + $0x8] sm:$0xff]   ;;  %v558_v12 = vld [vmem:[%s667_s0 + $0x10] sm:$0xff]  }
   0x5   :  { %515 = vmatprep.mubr.bf16.mxu0 %v556_v4  ;;  %523 = vmatprep.mubr.bf16.mxu1 %v560_v6  ;;  %v561_v11 = vld [vmem:[%s667_s0 + $0x28] sm:$0xff]   ;;  %v562_v13 = vld [vmem:[%s667_s0 + $0x30] sm:$0xff]   ;;  %v559_v14 = vld [vmem:[%s667_s0 + $0x18] sm:$0xff]  }
   0x6   :  { %v563_v15 = vld [vmem:[%s667_s0 + $0x38] sm:$0xff]  }
   0x7   :  { %502 = vmatpush3.bf16.msra.mxu0 %v549_v1  ;;  %540 = vmatpush3.bf16.msra.mxu1 %v549_v1 }
   0x8   :  { %503 = vmatprep.subr.bf16.mxu0 %v550_v2  ;;  %533 = vmatprep.subr.bf16.mxu1 %v550_v2 }
   0xb   :  { %504 = vmatpush3.bf16.msra.mxu0 %v550_v2  ;;  %541 = vmatpush3.bf16.msra.mxu1 %v550_v2 }
   0xc   :  { %505 = vmatprep.subr.bf16.mxu0 %v551_v3  ;;  %534 = vmatprep.subr.bf16.mxu1 %v551_v3 }
   0xf   :  { %506 = vmatpush3.bf16.msra.mxu0 %v551_v3  ;;  %542 = vmatpush3.bf16.msra.mxu1 %v551_v3 }
  0x10   :  { %507 = vmatprep.subr.bf16.mxu0 %v552_v5  ;;  %535 = vmatprep.subr.bf16.mxu1 %v552_v5 }
  0x13   :  { %508 = vmatpush3.bf16.msra.mxu0 %v552_v5  ;;  %543 = vmatpush3.bf16.msra.mxu1 %v552_v5 }
  0x14   :  { %509 = vmatprep.subr.bf16.mxu0 %v553_v7  ;;  %536 = vmatprep.subr.bf16.mxu1 %v553_v7 }
  0x17   :  { %510 = vmatpush3.bf16.msra.mxu0 %v553_v7  ;;  %544 = vmatpush3.bf16.msra.mxu1 %v553_v7 }
  0x18   :  { %511 = vmatprep.subr.bf16.mxu0 %v554_v8  ;;  %537 = vmatprep.subr.bf16.mxu1 %v554_v8 }
  0x1b   :  { %512 = vmatpush3.bf16.msra.mxu0 %v554_v8  ;;  %545 = vmatpush3.bf16.msra.mxu1 %v554_v8 }
  0x1c   :  { %513 = vmatprep.subr.bf16.mxu0 %v555_v9  ;;  %538 = vmatprep.subr.bf16.mxu1 %v555_v9 }
  0x1f   :  { %514 = vmatpush3.bf16.msra.mxu0 %v555_v9  ;;  %546 = vmatpush3.bf16.msra.mxu1 %v555_v9 }
  0x22   :  { %516 = vmatmul.mubr.bf16.vlgmr.msra.gmra.mrb[0].mxu0 %v557_v10  ;;  %524 = vmatmul.mubr.bf16.vlgmr.msra.gmra.mrb[0].mxu1 %v561_v11 }
  0x23   :  { %519 = vmatprep.mubr.bf16.mxu0 %v558_v12  ;;  %527 = vmatprep.mubr.bf16.mxu1 %v562_v13 }
  0x2a   :  { %520 = vmatmul.mubr.bf16.gmra.mrb[4].mxu0 %v559_v14  ;;  %528 = vmatmul.mubr.bf16.gmra.mrb[4].mxu1 %v563_v15 }
  0xf5   :  { %v517_v17 = vpop.f32.mrb[0].mxu0  ;;  %v525_v18 = vpop.f32.mrb[0].mxu1 }
  0xf6   :  { %v176_v19 = vpop.f32.mrb[1].mxu0  ;;  %v208_v20 = vpop.f32.mrb[1].mxu1  ;;  %v344_v32 = vmul.f32 %v517_v17, %v517_v17  ;;  %v352_v4 = vmul.f32 %v525_v18, %v525_v18 }
  0xf7   :  { %v518_v21 = vpop.f32.mrb[2].mxu0  ;;  %v526_v22 = vpop.f32.mrb[2].mxu1  ;;  %v342_v23 = vmul.f32 %v176_v19, %v176_v19  ;;  %v350_v62 = vmul.f32 %v208_v20, %v208_v20 }
  0xf8   :  { %v444_v24 = vpack.c.bf16 %v518_v21, %v517_v17  ;;  %v179_v25 = vpop.f32.mrb[3].mxu0  ;;  %v464_v26 = vpack.c.bf16 %v526_v22, %v525_v18  ;;  %v211_v27 = vpop.f32.mrb[3].mxu1  ;;  %v345_v35 = vmul.f32 %v518_v21, %v518_v21  ;;  %v353_v7 = vmul.f32 %v526_v22, %v526_v22 }
  0xf9   :  { %v439_v28 = vpack.c.bf16 %v179_v25, %v176_v19  ;;  %v320_v29 = vadd.f32 %v179_v25, %v176_v19  ;;  %v343_v30 = vmul.f32 %v179_v25, %v179_v25  ;;  %v459_v31 = vpack.c.bf16 %v211_v27, %v208_v20 }
  0xfa   :  { %476 = vst [vmem:[%s669_s2 + $0x8] sm:$0xff] %v444_v24   ;;  %480 = vst [vmem:[%s669_s2 + $0x28] sm:$0xff] %v464_v26   ;;  %v351_v3 = vmul.f32 %v211_v27, %v211_v27 }
  0xfb   :  { %440 = vst [vmem:[%s669_s2] sm:$0xff] %v439_v28   ;;  %v321_v33 = vadd.f32 %v517_v17, %v320_v29  ;;  %v358_v34 = vadd.f32 %v343_v30, %v342_v23  ;;  %479 = vst [vmem:[%s669_s2 + $0x20] sm:$0xff] %v459_v31  }
  0xfd   :  { %v359_v36 = vadd.f32 %v358_v34, %v344_v32  ;;  %v521_v37 = vpop.f32.mrb[4].mxu0  ;;  %v322_v38 = vadd.f32 %v518_v21, %v321_v33  ;;  %v529_v39 = vpop.f32.mrb[4].mxu1 }
  0xfe   :  { %v192_v40 = vpop.f32.mrb[5].mxu0  ;;  %v224_v41 = vpop.f32.mrb[5].mxu1  ;;  %v348_v56 = vmul.f32 %v521_v37, %v521_v37  ;;  %v356_v16 = vmul.f32 %v529_v39, %v529_v39 }
  0xff   :  { %v323_v42 = vadd.f32 %v322_v38, %v192_v40  ;;  %v346_v43 = vmul.f32 %v192_v40, %v192_v40  ;;  %v360_v44 = vadd.f32 %v359_v36, %v345_v35  ;;  %v522_v45 = vpop.f32.mrb[6].mxu0  ;;  %v530_v46 = vpop.f32.mrb[6].mxu1  ;;  %v354_v10 = vmul.f32 %v224_v41, %v224_v41 }
 0x100   :  { %v454_v47 = vpack.c.bf16 %v522_v45, %v521_v37  ;;  %v195_v48 = vpop.f32.mrb[7].mxu0  ;;  %v474_v49 = vpack.c.bf16 %v530_v46, %v529_v39  ;;  %v227_v50 = vpop.f32.mrb[7].mxu1  ;;  %v349_v59 = vmul.f32 %v522_v45, %v522_v45 }
 0x101   :  { %v361_v51 = vadd.f32 %v360_v44, %v346_v43  ;;  %v449_v52 = vpack.c.bf16 %v195_v48, %v192_v40  ;;  %v324_v53 = vadd.f32 %v323_v42, %v195_v48  ;;  %v347_v54 = vmul.f32 %v195_v48, %v195_v48 }
 0x102   :  { %478 = vst [vmem:[%s669_s2 + $0x18] sm:$0xff] %v454_v47   ;;  %482 = vst [vmem:[%s669_s2 + $0x38] sm:$0xff] %v474_v49   ;;  %v469_v55 = vpack.c.bf16 %v227_v50, %v224_v41  ;;  %v355_v15 = vmul.f32 %v227_v50, %v227_v50 }
 0x103   :  { %477 = vst [vmem:[%s669_s2 + $0x10] sm:$0xff] %v449_v52   ;;  %v325_v57 = vadd.f32 %v521_v37, %v324_v53  ;;  %v362_v58 = vadd.f32 %v361_v51, %v347_v54 }
 0x104   :  { %481 = vst [vmem:[%s669_s2 + $0x30] sm:$0xff] %v469_v55  }
 0x105   :  { %v363_v60 = vadd.f32 %v362_v58, %v348_v56  ;;  %v326_v61 = vadd.f32 %v522_v45, %v325_v57 }
 0x107   :  { %v327_v63 = vadd.f32 %v326_v61, %v208_v20  ;;  %v364_v0 = vadd.f32 %v363_v60, %v349_v59  ;;  %v357_v20 = vmul.f32 %v530_v46, %v530_v46 }
 0x109   :  { %v365_v1 = vadd.f32 %v364_v0, %v350_v62  ;;  %v328_v2 = vadd.f32 %v327_v63, %v211_v27 }
 0x10b   :  { %v329_v5 = vadd.f32 %v525_v18, %v328_v2  ;;  %v366_v6 = vadd.f32 %v365_v1, %v351_v3 }
 0x10d   :  { %v367_v8 = vadd.f32 %v366_v6, %v352_v4  ;;  %v330_v9 = vadd.f32 %v526_v22, %v329_v5 }
 0x10f   :  { %v331_v11 = vadd.f32 %v330_v9, %v224_v41  ;;  %v368_v12 = vadd.f32 %v367_v8, %v353_v7 }
 0x111   :  { %v369_v13 = vadd.f32 %v368_v12, %v354_v10  ;;  %v332_v14 = vadd.f32 %v331_v11, %v227_v50 }
 0x113   :  { %v333_v17 = vadd.f32 %v529_v39, %v332_v14  ;;  %v370_v19 = vadd.f32 %v369_v13, %v355_v15 }
 0x115   :  { %v334_v21 = vadd.f32 %v530_v46, %v333_v17  ;;  %v371_v23 = vadd.f32 %v370_v19, %v356_v16 }
 0x117   :  { %v335_v24 = vrot.slane %v334_v21, 4  ;;  %v372_v25 = vadd.f32 %v371_v23, %v357_v20 }
 0x119   :  { %v336_v26 = vadd.f32 %v335_v24, %v334_v21  ;;  %v373_v18 = vrot.slane %v372_v25, 4 }
 0x11b   :  { %v337_v27 = vrot.slane %v336_v26, 2  ;;  %v374_v28 = vadd.f32 %v373_v18, %v372_v25 }
 0x11d   :  { %v338_v29 = vadd.f32 %v337_v27, %v336_v26  ;;  %v375_v22 = vrot.slane %v374_v28, 2 }
 0x11f   :  { %v339_v30 = vrot.slane %v338_v29, 1  ;;  %v376_v31 = vadd.f32 %v375_v22, %v374_v28 }
 0x121   :  { %v340_v32 = vadd.f32 %v339_v30, %v338_v29  ;;  %v377_v33 = vrot.slane %v376_v31, 1 }
 0x123   :  { %341 = vst [vmem:[%s668_s3] sm:$0x1] %v340_v32  ;;  %v378_v34 = vadd.f32 %v377_v33, %v376_v31 }
 0x125   :  { %379 = vst [vmem:[%s668_s3 + $0x1] sm:$0x1] %v378_v34 }

// kernel: residual_block_forward.7
= control target key start
LH: loop header
LB: loop body
LE: loop exit
PB: predicated region body
PF: predicated region fallthrough
CT: control target
= control target key end

     0   :  { %v378_v11 = vmov 1966171168   ;;  %v44_v13 = vlaneseq  ;;  %s738_s1 = inlined_call_operand.vmem [shape: f32[8,128], index: 1, kind: input, shape index: {}]   ;;  %s739_s5 = inlined_call_operand.vmem [shape: f32[8,128], index: 5, kind: input, shape index: {}]   ;;  %s740_s0 = inlined_call_operand.vmem [shape: bf16[128,128], index: 0, kind: input, shape index: {}]   ;;  %s741_s4 = inlined_call_operand.vmem [shape: bf16[128,128], index: 4, kind: input, shape index: {}]   ;;  %s742_s2 = inlined_call_operand.vmem [shape: f32[1,128], index: 2, kind: input, shape index: {}]   ;;  %s743_s6 = inlined_call_operand.vmem [shape: f32[1,128], index: 6, kind: input, shape index: {}]   ;;  %s744_s3 = inlined_call_operand.vmem [shape: f32[1,128], index: 3, kind: input, shape index: {}]   ;;  %s745_s7 = inlined_call_operand.vmem [shape: f32[1,128], index: 7, kind: input, shape index: {}]   ;;  %s746_s8 = inlined_call_operand.vmem [shape: f32[128,128], index: 8, kind: output, shape index: {}]  }
   0x1   :  { %v29_v0 = vld [vmem:[%s738_s1] sm:$0xff]  ;;  %v42_v12 = vunpack.c.l.s4 %v378_v11  ;;  %v453_v20 = vld [vmem:[%s740_s0 + $0x8] sm:$0xff]   ;;  %v464_v23 = vld [vmem:[%s740_s0 + $0x10] sm:$0xff]  }
   0x2   :  { %v427_v1 = vmul.f32 0.0078125, %v29_v0  ;;  %v60_v2 = vld [vmem:[%s739_s5] sm:$0xff]  ;;  %v45_v16 = vshrl.u32 %v44_v13, 7  ;;  %v458_v21 = vld [vmem:[%s741_s4 + $0x8] sm:$0xff]   ;;  %v469_v24 = vld [vmem:[%s741_s4 + $0x10] sm:$0xff]   ;;  %v301_v33 = vunpack.c.l.bf16 %v453_v20  ;;  %v302_v35 = vunpack.c.h.bf16 %v453_v20 }
   0x3   :  { %v432_v3 = vmul.f32 0.0078125, %v60_v2  ;;  %v43_v15 = vunpack.c.0.s8 %v42_v12  ;;  %v443_v17 = vld [vmem:[%s740_s0] sm:$0xff]   ;;  %v479_v30 = vld [vmem:[%s740_s0 + $0x18] sm:$0xff]   ;;  %v333_v34 = vunpack.c.l.bf16 %v458_v21  ;;  %v334_v38 = vunpack.c.h.bf16 %v458_v21  ;;  %v508_v47 = vld [vmem:[%s740_s0 + $0x28] sm:$0xff]  }
   0x4   :  { %v33_v4 = vmul.f32 %v427_v1, %v427_v1  ;;  %v448_v19 = vld [vmem:[%s741_s4] sm:$0xff]   ;;  %v297_v22 = vunpack.c.l.bf16 %v443_v17  ;;  %v471_v26 = vsub.s32 0, %v45_v16  ;;  %v298_v28 = vunpack.c.h.bf16 %v443_v17  ;;  %v487_v36 = vld [vmem:[%s741_s4 + $0x18] sm:$0xff]   ;;  %v513_v48 = vld [vmem:[%s741_s4 + $0x28] sm:$0xff]  }
   0x5   :  { %v64_v5 = vmul.f32 %v432_v3, %v432_v3  ;;  %v46_v18 = vsub.s32 %v43_v15, %v45_v16  ;;  %v329_v27 = vunpack.c.l.bf16 %v448_v19  ;;  %v330_v29 = vunpack.c.h.bf16 %v448_v19  ;;  %v495_v41 = vld [vmem:[%s740_s0 + $0x20] sm:$0xff]   ;;  %v524_v54 = vld [vmem:[%s740_s0 + $0x30] sm:$0xff]   ;;  %v543_v2 = vld [vmem:[%s740_s0 + $0x38] sm:$0xff]  }
   0x6   :  { %v35_v6 = vrot.slane %v33_v4, 7  ;;  %v305_v39 = vunpack.c.l.bf16 %v464_v23  ;;  %v337_v40 = vunpack.c.l.bf16 %v469_v24  ;;  %v500_v42 = vld [vmem:[%s741_s4 + $0x20] sm:$0xff]   ;;  %v306_v44 = vunpack.c.h.bf16 %v464_v23  ;;  %v535_v60 = vld [vmem:[%s741_s4 + $0x30] sm:$0xff]   ;;  %v548_v4 = vld [vmem:[%s741_s4 + $0x38] sm:$0xff]  }
   0x7   :  { %v66_v7 = vrot.slane %v64_v5, 7  ;;  %v338_v45 = vunpack.c.h.bf16 %v469_v24  ;;  %v309_v46 = vunpack.c.l.bf16 %v479_v30  ;;  %v30_v49 = vld [vmem:[%s742_s2] sm:$0x1]  ;;  %v341_v51 = vunpack.c.l.bf16 %v487_v36 }
   0x8   :  { %v37_v8 = vsub.f32 %v427_v1, %v35_v6  ;;  %v310_v52 = vunpack.c.h.bf16 %v479_v30  ;;  %v342_v53 = vunpack.c.h.bf16 %v487_v36  ;;  %v61_v56 = vld [vmem:[%s743_s6] sm:$0x1]  ;;  %v313_v57 = vunpack.c.l.bf16 %v495_v41 }
   0x9   :  { %v68_v9 = vsub.f32 %v432_v3, %v66_v7  ;;  %v345_v58 = vunpack.c.l.bf16 %v500_v42  ;;  %v314_v59 = vunpack.c.h.bf16 %v495_v41  ;;  %v346_v62 = vunpack.c.h.bf16 %v500_v42  ;;  %v62_v15 = vld [vmem:[%s745_s7] sm:$0x1] }
   0xa   :  { %v38_v10 = vadd.f32 1e-05, %v37_v8  ;;  %v317_v63 = vunpack.c.l.bf16 %v508_v47  ;;  %v349_v0 = vunpack.c.l.bf16 %v513_v48  ;;  %v318_v6 = vunpack.c.h.bf16 %v508_v47 }
   0xb   :  { %v69_v14 = vadd.f32 1e-05, %v68_v9  ;;  %v350_v7 = vunpack.c.h.bf16 %v513_v48  ;;  %v321_v8 = vunpack.c.l.bf16 %v524_v54  ;;  %v31_v9 = vld [vmem:[%s744_s3] sm:$0x1]  ;;  %v353_v11 = vunpack.c.l.bf16 %v535_v60 }
   0xc   :  { %374 = vrsqrt.f32 %v38_v10  ;;  %v322_v12 = vunpack.c.h.bf16 %v524_v54  ;;  %v354_v13 = vunpack.c.h.bf16 %v535_v60  ;;  %v357_v20 = vunpack.c.l.bf16 %v548_v4 }
   0xd   :  { %376 = vrsqrt.f32 %v69_v14  ;;  %v326_v24 = vunpack.c.h.bf16 %v543_v2 }
  0x16   :  { %v375_v25 = vpop.eup %374 }
  0x17   :  { %v377_v31 = vpop.eup %376  ;;  %v47_v32 = vrot.slane %v375_v25, %v46_v18 }
  0x18   :  { %v78_v37 = vrot.slane %v377_v31, %v46_v18 }
  0x19   :  { %v48_v43 = vcombine.high %v47_v32, %v47_v32 }
  0x1a   :  { %v79_v50 = vcombine.high %v78_v37, %v78_v37 }
  0x1b   :  { %v55_v55 = vrot.slane %v48_v43, %v46_v18 }
  0x1c   :  { %v86_v61 = vrot.slane %v79_v50, %v46_v18  ;;  %v325_v18 = vunpack.c.l.bf16 %v543_v2 }
  0x1d   :  { %v57_v5 = vmul.f32 %v55_v55, %v30_v49 }
  0x1e   :  { %v88_v10 = vmul.f32 %v86_v61, %v61_v56 }
  0x1f   :  { %v58_v14 = vmul.f32 %v57_v5, %v427_v1  ;;  %v564_v16 = vrot.slane %v57_v5, %v471_v26  ;;  %v358_v1 = vunpack.c.h.bf16 %v548_v4 }
  0x20   :  { %v89_v21 = vmul.f32 %v88_v10, %v432_v3  ;;  %v570_v23 = vrot.slane %v88_v10, %v471_v26 }
  0x21   :  { %v59_v25 = vsub.f32 %v31_v9, %v58_v14  ;;  %v129_v31 = vmul.f32 %v297_v22, %v564_v16  ;;  %v130_v32 = vmul.f32 %v298_v28, %v564_v16  ;;  %v131_v37 = vmul.f32 %v301_v33, %v564_v16 }
  0x22   :  { %v90_v43 = vsub.f32 %v62_v15, %v89_v21  ;;  %v205_v3 = vmul.f32 %v329_v27, %v570_v23  ;;  %v206_v49 = vmul.f32 %v330_v29, %v570_v23  ;;  %v207_v50 = vmul.f32 %v333_v34, %v570_v23 }
  0x23   :  { %v589_v55 = vrot.slane %v59_v25, %v471_v26  ;;  %v132_v22 = vmul.f32 %v302_v35, %v564_v16  ;;  %v208_v17 = vmul.f32 %v334_v38, %v570_v23  ;;  %v133_v28 = vmul.f32 %v305_v39, %v564_v16 }
  0x24   :  { %v595_v33 = vrot.slane %v90_v43, %v471_v26  ;;  %v209_v27 = vmul.f32 %v337_v40, %v570_v23  ;;  %v134_v56 = vmul.f32 %v306_v44, %v564_v16  ;;  %v210_v19 = vmul.f32 %v338_v45, %v570_v23 }
  0x25   :  { %v151_v29 = vadd.f32 %v589_v55, %v129_v31  ;;  %v152_v34 = vadd.f32 %v589_v55, %v130_v32  ;;  %v153_v61 = vadd.f32 %v589_v55, %v131_v37  ;;  %v154_v35 = vadd.f32 %v589_v55, %v132_v22 }
  0x26   :  { %v155_v38 = vadd.f32 %v589_v55, %v133_v28  ;;  %v156_v39 = vadd.f32 %v589_v55, %v134_v56  ;;  %v135_v26 = vmul.f32 %v309_v46, %v564_v16  ;;  %v211_v40 = vmul.f32 %v341_v51, %v570_v23 }
  0x27   :  { %v221_v44 = vadd.f32 %v205_v3, %v151_v29  ;;  %v222_v45 = vadd.f32 %v206_v49, %v152_v34  ;;  %v223_v5 = vadd.f32 %v207_v50, %v153_v61  ;;  %v224_v9 = vadd.f32 %v208_v17, %v154_v35 }
  0x28   :  { %v225_v10 = vadd.f32 %v209_v27, %v155_v38  ;;  %v226_v14 = vadd.f32 %v210_v19, %v156_v39  ;;  %v157_v15 = vadd.f32 %v589_v55, %v135_v26  ;;  %v136_v21 = vmul.f32 %v310_v52, %v564_v16 }
  0x29   :  { %v243_v25 = vadd.f32 %v595_v33, %v221_v44  ;;  %v244_v31 = vadd.f32 %v595_v33, %v222_v45  ;;  %v245_v46 = vadd.f32 %v595_v33, %v223_v5  ;;  %v246_v51 = vadd.f32 %v595_v33, %v224_v9 }
  0x2a   :  { %v247_v32 = vadd.f32 %v595_v33, %v225_v10  ;;  %v248_v37 = vadd.f32 %v595_v33, %v226_v14  ;;  %v227_v43 = vadd.f32 %v211_v40, %v157_v15  ;;  %v158_v3 = vadd.f32 %v589_v55, %v136_v21 }
  0x2b   :  { %v259_v49 = vmax.f32 %v243_v25, 0.0  ;;  %v260_v50 = vmax.f32 %v244_v31, 0.0  ;;  %v261_v22 = vmax.f32 %v245_v46, 0.0  ;;  %v262_v30 = vmax.f32 %v246_v51, 0.0 }
  0x2c   :  { %v263_v52 = vmax.f32 %v247_v32, 0.0  ;;  %v264_v17 = vmax.f32 %v248_v37, 0.0  ;;  %v249_v28 = vadd.f32 %v595_v33, %v227_v43  ;;  %v212_v27 = vmul.f32 %v342_v53, %v570_v23 }
  0x2d   :  { %275 = vst [vmem:[%s746_s8] sm:$0xff] %v259_v49  ;;  %276 = vst [vmem:[%s746_s8 + $0x8] sm:$0xff] %v260_v50  ;;  %v137_v36 = vmul.f32 %v313_v57, %v564_v16  ;;  %v213_v53 = vmul.f32 %v345_v58, %v570_v23  ;;  %v138_v56 = vmul.f32 %v314_v59, %v564_v16 }
  0x2e   :  { %277 = vst [vmem:[%s746_s8 + $0x10] sm:$0xff] %v261_v22  ;;  %278 = vst [vmem:[%s746_s8 + $0x18] sm:$0xff] %v262_v30  ;;  %v214_v19 = vmul.f32 %v346_v62, %v570_v23  ;;  %v265_v57 = vmax.f32 %v249_v28, 0.0  ;;  %v228_v29 = vadd.f32 %v212_v27, %v158_v3  ;;  %v139_v58 = vmul.f32 %v317_v63, %v564_v16 }
  0x2f   :  { %279 = vst [vmem:[%s746_s8 + $0x20] sm:$0xff] %v263_v52  ;;  %280 = vst [vmem:[%s746_s8 + $0x28] sm:$0xff] %v264_v17  ;;  %v215_v41 = vmul.f32 %v349_v0, %v570_v23  ;;  %v159_v42 = vadd.f32 %v589_v55, %v137_v36  ;;  %v160_v59 = vadd.f32 %v589_v55, %v138_v56 }
  0x30   :  { %v140_v62 = vmul.f32 %v318_v6, %v564_v16  ;;  %v216_v34 = vmul.f32 %v350_v7, %v570_v23  ;;  %281 = vst [vmem:[%s746_s8 + $0x30] sm:$0xff] %v265_v57  ;;  %v250_v63 = vadd.f32 %v595_v33, %v228_v29  ;;  %v161_v0 = vadd.f32 %v589_v55, %v139_v58 }
  0x31   :  { %v141_v61 = vmul.f32 %v321_v8, %v564_v16  ;;  %v217_v47 = vmul.f32 %v353_v11, %v570_v23  ;;  %v229_v6 = vadd.f32 %v213_v53, %v159_v42  ;;  %v230_v35 = vadd.f32 %v214_v19, %v160_v59 }
  0x32   :  { %v162_v48 = vadd.f32 %v589_v55, %v140_v62  ;;  %v142_v7 = vmul.f32 %v322_v12, %v564_v16  ;;  %v266_v38 = vmax.f32 %v250_v63, 0.0  ;;  %v231_v39 = vadd.f32 %v215_v41, %v161_v0 }
  0x33   :  { %v163_v26 = vadd.f32 %v589_v55, %v141_v61  ;;  %v218_v8 = vmul.f32 %v354_v13, %v570_v23  ;;  %v251_v40 = vadd.f32 %v595_v33, %v229_v6  ;;  %v252_v11 = vadd.f32 %v595_v33, %v230_v35 }
  0x34   :  { %v232_v44 = vadd.f32 %v216_v34, %v162_v48  ;;  %v164_v45 = vadd.f32 %v589_v55, %v142_v7  ;;  %282 = vst [vmem:[%s746_s8 + $0x38] sm:$0xff] %v266_v38  ;;  %v253_v54 = vadd.f32 %v595_v33, %v231_v39  ;;  %v143_v5 = vmul.f32 %v325_v18, %v564_v16 }
  0x35   :  { %v233_v12 = vadd.f32 %v217_v47, %v163_v26  ;;  %v219_v60 = vmul.f32 %v357_v20, %v570_v23  ;;  %v267_v13 = vmax.f32 %v251_v40, 0.0  ;;  %v268_v9 = vmax.f32 %v252_v11, 0.0 }
  0x36   :  { %v254_v10 = vadd.f32 %v595_v33, %v232_v44  ;;  %v234_v14 = vadd.f32 %v218_v8, %v164_v45  ;;  %v269_v15 = vmax.f32 %v253_v54, 0.0  ;;  %v165_v25 = vadd.f32 %v589_v55, %v143_v5 }
  0x37   :  { %v255_v21 = vadd.f32 %v595_v33, %v233_v12  ;;  %v144_v31 = vmul.f32 %v326_v24, %v564_v16  ;;  %283 = vst [vmem:[%s746_s8 + $0x40] sm:$0xff] %v267_v13  ;;  %284 = vst [vmem:[%s746_s8 + $0x48] sm:$0xff] %v268_v9  ;;  %v220_v46 = vmul.f32 %v358_v1, %v570_v23 }
  0x38   :  { %v270_v18 = vmax.f32 %v254_v10, 0.0  ;;  %v256_v20 = vadd.f32 %v595_v33, %v234_v14  ;;  %285 = vst [vmem:[%s746_s8 + $0x50] sm:$0xff] %v269_v15  ;;  %v235_v16 = vadd.f32 %v219_v60, %v165_v25 }
  0x39   :  { %v271_v2 = vmax.f32 %v255_v21, 0.0  ;;  %v166_v24 = vadd.f32 %v589_v55, %v144_v31 }
  0x3a   :  { %286 = vst [vmem:[%s746_s8 + $0x58] sm:$0xff] %v270_v18  ;;  %v272_v51 = vmax.f32 %v256_v20, 0.0  ;;  %v257_v4 = vadd.f32 %v595_v33, %v235_v16 }
  0x3b   :  { %287 = vst [vmem:[%s746_s8 + $0x60] sm:$0xff] %v271_v2  ;;  %v236_v23 = vadd.f32 %v220_v46, %v166_v24 }
  0x3c   :  { %288 = vst [vmem:[%s746_s8 + $0x68] sm:$0xff] %v272_v51  ;;  %v273_v1 = vmax.f32 %v257_v4, 0.0 }
  0x3d   :  { %v258_v32 = vadd.f32 %v595_v33, %v236_v23 }
  0x3e   :  { %289 = vst [vmem:[%s746_s8 + $0x70] sm:$0xff] %v273_v1 }
  0x3f   :  { %v274_v55 = vmax.f32 %v258_v32, 0.0 }
  0x41   :  { %290 = vst [vmem:[%s746_s8 + $0x78] sm:$0xff] %v274_v55 }

// kernel: residual_block_forward.5
= control target key start
LH: loop header
LB: loop body
LE: loop exit
PB: predicated region body
PF: predicated region fallthrough
CT: control target
= control target key end

     0   :  { %s3672_s24 = smov 0   ;;  %s4391_s0 = inlined_call_operand.vmem [shape: bf16[2,10,10,128], index: 0, kind: input, shape index: {}]   ;;  %s4392_s1 = inlined_call_operand.vmem [shape: f32[1,10,10,1], index: 1, kind: input, shape index: {}]   ;;  %s4393_s2 = inlined_call_operand.vmem [shape: f32[8,128], index: 2, kind: input, shape index: {}]   ;;  %s4394_s3 = inlined_call_operand.vmem [shape: f32[1,128], index: 3, kind: input, shape index: {}]   ;;  %s4395_s4 = inlined_call_operand.vmem [shape: f32[1,128], index: 4, kind: input, shape index: {}]   ;;  %s4396_s5 = inlined_call_operand.vmem [shape: bf16[9,128,128], index: 5, kind: input, shape index: {}]   ;;  %s4397_s6 = inlined_call_operand.vmem [shape: bf16[2,8,8,128], index: 6, kind: output, shape index: {0}]   ;;  %s4398_s7 = inlined_call_operand.vmem [shape: f32[16,128], index: 7, kind: output, shape index: {1}]  }
   0x1 LB: > { %s2782_s25 = sadd.s32 4294967295, %s3627_s24   ;;  %p2786_p0 = scmp.ge.s32.totalorder %s3627_s24, 1  ;;  %s3627_s24 = sphi %s3672_s24, %s18_s24  }
   0x2   : > { %p240_p1 = scmp.lt.s32.totalorder %s3627_s24, 3 }
   0x4   : > { %p241_p2 = pnand %p2786_p0, %p240_p1 }
   0x5   : > { %v440_v0 = vld [vmem:[%s4392_s1 + $0x30] sm:$0xff] (!%p241_p2)  ;;  %v3629_v2 = vmov (!%p241_p2), 0   ;;  %v442_v3 = vld [vmem:[%s4392_s1 + $0x40] sm:$0xff] (!%p241_p2)  ;;  %v439_v5 = vld [vmem:[%s4392_s1 + $0x28] sm:$0x3] (!%p241_p2)  ;;  %v306_v47 = vlaneseq (!%p241_p2)  ;;  %p276_p3 = scmp.lt.s32.totalorder (!%p241_p2), %s2782_s25, 1 }
   0x6   : > { %244 = sbr.rel (%p241_p2) target bundleno = 552 (0x228), region = 44  ;;  %v436_v1 = vld [vmem:[%s4392_s1 + $0x10] sm:$0xff] (!%p241_p2)  ;;  %3534 = vset.pattern.permute.xlu1 (!%p241_p2), %v3629_v2  ;;  %3533 = vset.pattern.permute.xlu0 (!%p241_p2), %v3629_v2  ;;  %v438_v4 = vld [vmem:[%s4392_s1 + $0x20] sm:$0xff] (!%p241_p2)  ;;  %v437_v6 = vld [vmem:[%s4392_s1 + $0x18] sm:$0x3] (!%p241_p2)  ;;  %vm1128_vm3 = vcmask (!%p241_p2), 1042432  }
   0x7   : > { %486 = vperm.xlu1 (!%p241_p2), %3534, %v440_v0   ;;  %466 = vperm.xlu0 (!%p241_p2), %3533, %v436_v1   ;;  %v3535_v7 = vld [vmem:[%s4396_s5 + $0x100] sm:$0xff] (!%p241_p2)   ;;  %v3536_v8 = vld [vmem:[%s4396_s5 + $0x108] sm:$0xff] (!%p241_p2)   ;;  %v441_v10 = vld [vmem:[%s4392_s1 + $0x38] sm:$0x3] (!%p241_p2)  ;;  %v3630_v45 = vmov (!%p241_p2), 1966171168  }
   0x8   : > { %3321 = vmatprep.subr.bf16.mxu0 (!%p241_p2), %v3535_v7  ;;  %v443_v9 = vld [vmem:[%s4392_s1 + $0x48] sm:$0x3] (!%p241_p2)  ;;  %v3537_v11 = vld [vmem:[%s4396_s5 + $0x110] sm:$0xff] (!%p241_p2)   ;;  %v3538_v12 = vld [vmem:[%s4396_s5 + $0x40] sm:$0xff] (!%p241_p2)   ;;  %v304_v46 = vunpack.c.l.s4 (!%p241_p2), %v3630_v45  ;;  %v307_v49 = vshrl.u32 (!%p241_p2), %v306_v47, 7  ;;  %vm1129_vm4 = vcmask (!%p241_p2), 1046532  }
   0x9   : > { %3322 = vmatpush3.bf16.msra.mxu0 (!%p241_p2), %v3535_v7  ;;  %v3540_v13 = vld [vmem:[%s4396_s5 + $0x48] sm:$0xff] (!%p241_p2)   ;;  %v434_v15 = vld [vmem:[%s4392_s1] sm:$0xff] (!%p241_p2)  ;;  %3225 = vmatprep.subr.bf16.mxu1 (!%p241_p2), %v3538_v12  ;;  %v3539_v16 = vld [vmem:[%s4396_s5 + $0x118] sm:$0xff] (!%p241_p2)   ;;  %vm706_vm0 = vsmask.f32 (!%p241_p2), 3328 }
   0xa   : > { %3323 = vmatprep.subr.bf16.mxu0 (!%p241_p2), %v3536_v8  ;;  %v435_v14 = vld [vmem:[%s4392_s1 + $0x8] sm:$0x3] (!%p241_p2)  ;;  %3226 = vmatpush3.bf16.msra.mxu1 (!%p241_p2), %v3538_v12  ;;  %v3542_v17 = vld [vmem:[%s4396_s5 + $0x50] sm:$0xff] (!%p241_p2)   ;;  %v446_v18 = vld [vmem:[%s4392_s1 + $0x60] sm:$0xff] (!%p241_p2)  ;;  %v305_v48 = vunpack.c.0.s8 (!%p241_p2), %v304_v46  ;;  %v365_v58 = vsub.s32 (!%p241_p2), 0, %v307_v49 }
   0xb   : > { %496 = vperm.xlu1 (!%p241_p2), %3534, %v442_v3   ;;  %476 = vperm.xlu0 (!%p241_p2), %3533, %v438_v4   ;;  %v444_v19 = vld [vmem:[%s4392_s1 + $0x50] sm:$0xff] (!%p241_p2)  ;;  %v3541_v20 = vld [vmem:[%s4396_s5 + $0x120] sm:$0xff] (!%p241_p2)   ;;  %v3544_v21 = vld [vmem:[%s4396_s5 + $0x58] sm:$0xff] (!%p241_p2)   ;;  %vm707_vm1 = vsmask.f32 (!%p241_p2), 7440 }
   0xc   : > { %3227 = vmatprep.subr.bf16.mxu1 (!%p241_p2), %v3540_v13  ;;  %v450_v22 = vld [vmem:[%s4392_s1 + $0x80] sm:$0xff] (!%p241_p2)  ;;  %v448_v23 = vld [vmem:[%s4392_s1 + $0x70] sm:$0xff] (!%p241_p2)  ;;  %v3543_v24 = vld [vmem:[%s4396_s5 + $0x128] sm:$0xff] (!%p241_p2)   ;;  %v308_v50 = vsub.s32 (!%p241_p2), %v305_v48, %v307_v49 }
   0xd   : > { %3324 = vmatpush3.bf16.msra.mxu0 %v3536_v8  ;;  %v3546_v25 = vld [vmem:[%s4396_s5 + $0x60] sm:$0xff]   ;;  %v447_v26 = vld [vmem:[%s4392_s1 + $0x68] sm:$0x3]  ;;  %v445_v27 = vld [vmem:[%s4392_s1 + $0x58] sm:$0x3]  ;;  %s4404_s25 = smov (!%p276_p3, %s2782_s25), 1 }
   0xe   : > { %3325 = vmatprep.subr.bf16.mxu0 %v3537_v11  ;;  %3228 = vmatpush3.bf16.msra.mxu1 %v3540_v13  ;;  %v3545_v28 = vld [vmem:[%s4396_s5 + $0x130] sm:$0xff]   ;;  %v3548_v29 = vld [vmem:[%s4396_s5 + $0x68] sm:$0xff]   ;;  %v449_v31 = vld [vmem:[%s4392_s1 + $0x78] sm:$0x3]  ;;  %s3521_s20 = smul.u32 80, %s4404_s25  ;;  %s2790_s8 = sshll.u32 %s4404_s25, 3 }
   0xf   : > { %481 = vperm.xlu1 %3534, %v439_v5   ;;  %471 = vperm.xlu0 %3533, %v437_v6   ;;  %v451_v30 = vld [vmem:[%s4392_s1 + $0x88] sm:$0x3]  ;;  %v3547_v32 = vld [vmem:[%s4396_s5 + $0x138] sm:$0xff]   ;;  %v3550_v33 = vld [vmem:[%s4396_s5 + $0x70] sm:$0xff]   ;;  %s4373_s11 = scalar_lea.vmem %s4398_s7, %s2790_s8  ;;  %s3073_s12 = sshll.u32 %s4404_s25, 5 }
  0x10   : > { %3229 = vmatprep.subr.bf16.mxu1 %v3542_v17  ;;  %v453_v34 = vld [vmem:[%s4392_s1 + $0x98] sm:$0x3]  ;;  %v452_v35 = vld [vmem:[%s4392_s1 + $0x90] sm:$0xff]  ;;  %v3788_v36 = vld [vmem:[%s4396_s5 + $0x140] sm:$0xff]   ;;  %s3816_s23 = scalar_lea.vmem %s4391_s0, %s3521_s20  ;;  %s4380_s15 = scalar_lea.vmem %s4397_s6, %s3073_s12 }
  0x11   : > { %3326 = vmatpush3.bf16.msra.mxu0 %v3537_v11  ;;  %v3552_v37 = vld [vmem:[%s4396_s5 + $0x78] sm:$0xff]   ;;  %v3797_v38 = vld [vmem:[%s4396_s5] sm:$0xff]   ;;  %v327_v7 = vld [vmem:[%s3816_s23 + $0x14] sm:$0x1] }
  0x12   : > { %3327 = vmatprep.subr.bf16.mxu0 %v3539_v16  ;;  %3230 = vmatpush3.bf16.msra.mxu1 %v3542_v17  ;;  %v291_v39 = vld [vmem:[%s4393_s2] sm:$0xff]  ;;  %v328_v60 = vld [vmem:[%s3816_s23 + $0x8] ss:$16 sps:$4 sm:$0xff]   ;;  %v325_v8 = vld [vmem:[%s3816_s23 + $0xc] sm:$0x1] }
  0x13   : > { %501 = vperm.xlu1 %3534, %v443_v9   ;;  %491 = vperm.xlu0 %3533, %v441_v10   ;;  %v294_v40 = vmul.f32 0.0078125, %v291_v39  ;;  %v292_v55 = vld [vmem:[%s4394_s3] sm:$0x1]  ;;  %v348_v62 = vunpack.c.h.bf16 %v328_v60  ;;  %v344_v0 = vunpack.c.l.bf16 %v328_v60  ;;  %v347_v9 = vunpack.c.l.bf16 %v327_v7  ;;  %v323_v17 = vld [vmem:[%s3816_s23 + $0x4] sm:$0x1]  ;;  %vm3928_vm2 = vmor %vm706_vm0, %vm707_vm1 }
  0x14   : > { %3231 = vmatprep.subr.bf16.mxu1 %v3544_v21  ;;  %v293_v59 = vld [vmem:[%s4395_s4] sm:$0x1]  ;;  %v345_v10 = vunpack.c.l.bf16 %v325_v8  ;;  %vm4097_vm5 = vmor %vm1128_vm3, %vm1129_vm4 }
  0x15   : > { %3328 = vmatpush3.bf16.msra.mxu0 %v3539_v16  ;;  %v295_v41 = vmul.f32 %v294_v40, %v294_v40  ;;  %v330_v1 = vld [vmem:[%s3816_s23 + $0x10] ss:$16 sps:$4 sm:$0xff]   ;;  %v329_v16 = vld [vmem:[%s3816_s23 + $0x1c] sm:$0x1] }
  0x16   : > { %3329 = vmatprep.subr.bf16.mxu0 %v3541_v20  ;;  %3232 = vmatpush3.bf16.msra.mxu1 %v3544_v21  ;;  %v350_v2 = vunpack.c.h.bf16 %v330_v1  ;;  %v346_v6 = vunpack.c.l.bf16 %v330_v1 }
  0x17   : > { %461 = vperm.xlu1 %3534, %v435_v14   ;;  %456 = vperm.xlu0 %3533, %v434_v15   ;;  %v297_v42 = vrot.slane %v295_v41, 7  ;;  %v331_v15 = vld [vmem:[%s3816_s23 + $0x24] sm:$0x1] }
  0x18   : > { %3233 = vmatprep.subr.bf16.mxu1 %v3546_v25  ;;  %v339_v41 = vld [vmem:[%s3816_s23 + $0x44] sm:$0x1] }
  0x19   : > { %3330 = vmatpush3.bf16.msra.mxu0 %v3541_v20  ;;  %v299_v43 = vsub.f32 %v294_v40, %v297_v42  ;;  %v3852_v42 = vld [vmem:[%s3816_s23 + $0x3c] sm:$0x1] }
  0x1a   : > { %3331 = vmatprep.subr.bf16.mxu0 %v3543_v24  ;;  %3234 = vmatpush3.bf16.msra.mxu1 %v3546_v25  ;;  %v335_v25 = vld [vmem:[%s3816_s23 + $0x34] sm:$0x1] }
  0x1b   : > { %516 = vperm.xlu1 %3534, %v446_v18   ;;  %506 = vperm.xlu0 %3533, %v444_v19   ;;  %v300_v44 = vadd.f32 1e-05, %v299_v43  ;;  %v322_v18 = vld [vmem:[%s3816_s23] ss:$48 sps:$4 sm:$0xff]   ;;  %v355_v39 = vunpack.c.l.bf16 %v335_v25 }
  0x1c   : > { %3235 = vmatprep.subr.bf16.mxu1 %v3548_v29  ;;  %v332_v19 = vld [vmem:[%s3816_s23 + $0x28] ss:$24 sps:$4 sm:$0xff]  }
  0x1d   : > { %3332 = vmatpush3.bf16.msra.mxu0 %v3543_v24  ;;  %3619 = vrsqrt.f32 %v300_v44  ;;  %v3843_v24 = vld [vmem:[%s3816_s23 + $0x38] ss:$16 sps:$4 sm:$0xff]  }
  0x1e   : > { %3333 = vmatprep.subr.bf16.mxu0 %v3545_v28  ;;  %3236 = vmatpush3.bf16.msra.mxu1 %v3548_v29 }
  0x1f   : > { %536 = vperm.xlu1 %3534, %v450_v22   ;;  %526 = vperm.xlu0 %3533, %v448_v23   ;;  %v351_v22 = vunpack.c.l.bf16 %v331_v15  ;;  %v349_v23 = vunpack.c.l.bf16 %v329_v16 }
  0x20   : > { %3237 = vmatprep.subr.bf16.mxu1 %v3550_v33 }
  0x21   : > { %3334 = vmatpush3.bf16.msra.mxu0 %v3545_v28 }
  0x22   : > { %3335 = vmatprep.subr.bf16.mxu0 %v3547_v32  ;;  %3238 = vmatpush3.bf16.msra.mxu1 %v3550_v33  ;;  %v354_v33 = vunpack.c.h.bf16 %v322_v18 }
  0x23   : > { %521 = vperm.xlu1 %3534, %v447_v26   ;;  %511 = vperm.xlu0 %3533, %v445_v27   ;;  %v333_v26 = vld [vmem:[%s3816_s23 + $0x2c] sm:$0x1] }
  0x24   : > { %3239 = vmatprep.subr.bf16.mxu1 %v3552_v37 }
  0x25   : > { %3336 = vmatpush3.bf16.msra.mxu0 %v3547_v32  ;;  %v342_v32 = vunpack.c.l.bf16 %v322_v18 }
  0x26   : > { %3345 = vmatprep.subr.bf16.mxu0 %v3788_v36  ;;  %3240 = vmatpush3.bf16.msra.mxu1 %v3552_v37  ;;  %v356_v37 = vunpack.c.l.bf16 %v3843_v24 }
  0x27   : > { %541 = vperm.xlu1 %3534, %v451_v30   ;;  %531 = vperm.xlu0 %3533, %v449_v31   ;;  %v3620_v51 = vpop.eup %3619  ;;  %v343_v31 = vunpack.c.l.bf16 %v323_v17 }
  0x28   : > { %3249 = vmatprep.subr.bf16.mxu1 %v3797_v38  ;;  %v309_v52 = vrot.slane %v3620_v51, %v308_v50 }
  0x2a   : > { %v310_v53 = vcombine.high %v309_v52, %v309_v52 }
  0x2b   : > { %551 = vperm.xlu1 %3534, %v453_v34   ;;  %546 = vperm.xlu0 %3533, %v452_v35   ;;  %v352_v34 = vunpack.c.l.bf16 %v332_v19  ;;  %v358_v35 = vunpack.c.h.bf16 %v332_v19 }
  0x2c   : > { %v317_v54 = vrot.slane %v310_v53, %v308_v50 }
  0x2e   : > { %v319_v56 = vmul.f32 %v317_v54, %v292_v55  ;;  %v359_v55 = vunpack.c.l.bf16 %v339_v41 }
  0x30   : > { %v320_v57 = vmul.f32 %v319_v56, %v294_v40  ;;  %v3822_v63 = vrot.slane %v319_v56, %v365_v58  ;;  %v353_v40 = vunpack.c.l.bf16 %v333_v26  ;;  %v357_v56 = vunpack.c.l.bf16 %v3852_v42 }
  0x32   : > { %v321_v61 = vsub.f32 %v293_v59, %v320_v57  ;;  %v374_v3 = vmul.f32 %v3822_v63, %v348_v62  ;;  %v370_v5 = vmul.f32 %v3822_v63, %v344_v0  ;;  %v376_v13 = vmul.f32 %v3822_v63, %v350_v2 }
  0x33   : > { %v372_v14 = vmul.f32 %v3822_v63, %v346_v6  ;;  %v373_v20 = vmul.f32 %v3822_v63, %v347_v9  ;;  %v371_v21 = vmul.f32 %v3822_v63, %v345_v10  ;;  %v377_v47 = vmul.f32 %v3822_v63, %v351_v22  ;;  %v341_v9 = vld [vmem:[%s3816_s23 + $0x4c] sm:$0x1] }
  0x34   : > { %v3826_v4 = vrot.slane %v321_v61, %v365_v58  ;;  %v375_v48 = vmul.f32 %v3822_v63, %v349_v23  ;;  %v369_v53 = vmul.f32 %v3822_v63, %v343_v31  ;;  %v368_v54 = vmul.f32 %v3822_v63, %v342_v32 }
  0x35   : > { %v380_v59 = vmul.f32 %v3822_v63, %v354_v33  ;;  %v378_v60 = vmul.f32 %v3822_v63, %v352_v34  ;;  %v384_v2 = vmul.f32 %v3822_v63, %v358_v35  ;;  %v385_v22 = vmul.f32 %v3822_v63, %v359_v55 }
  0x36   : > { %v400_v11 = vadd.f32 %v3826_v4, %v374_v3  ;;  %v396_v12 = vadd.f32 %v3826_v4, %v370_v5  ;;  %v402_v29 = vadd.f32 %v3826_v4, %v376_v13  ;;  %v398_v30 = vadd.f32 %v3826_v4, %v372_v14 }
  0x37   : > { %v399_v45 = vadd.f32 %v3826_v4, %v373_v20  ;;  %v397_v46 = vadd.f32 %v3826_v4, %v371_v21  ;;  %v403_v0 = vadd.f32 %v3826_v4, %v377_v47  ;;  %v401_v1 = vadd.f32 %v3826_v4, %v375_v48 }
  0x38   : > { %v420_v27 = vmax.f32 %v400_v11, 0.0  ;;  %v416_v28 = vmax.f32 %v396_v12, 0.0  ;;  %v422_v51 = vmax.f32 %v402_v29, 0.0  ;;  %v418_v52 = vmax.f32 %v398_v30, 0.0 }
  0x39   : > { %v382_v3 = vmul.f32 %v3822_v63, %v356_v37  ;;  %v419_v7 = vmax.f32 %v399_v45, 0.0  ;;  %v417_v8 = vmax.f32 %v397_v46, 0.0  ;;  %v3869_v10 = vadd.f32 %v3826_v4, %v369_v53 }
  0x3a   : > { %v3872_v11 = vadd.f32 %v3826_v4, %v368_v54  ;;  %v381_v12 = vmul.f32 %v3822_v63, %v355_v39  ;;  %v379_v13 = vmul.f32 %v3822_v63, %v353_v40  ;;  %v3877_v16 = vadd.f32 %v3826_v4, %v380_v59 }
  0x3b   : > { %v3880_v17 = vadd.f32 %v3826_v4, %v378_v60  ;;  %v3883_v20 = vadd.f32 %v3826_v4, %v384_v2  ;;  %v3886_v21 = vadd.f32 %v3826_v4, %v382_v3  ;;  %v361_v23 = vunpack.c.l.bf16 %v341_v9 }
  0x3c   : > { %v415_v29 = vmax.f32 %v3869_v10, 0.0  ;;  %v414_v30 = vmax.f32 %v3872_v11, 0.0  ;;  %v3892_v31 = vadd.f32 %v3826_v4, %v381_v12  ;;  %v3895_v32 = vadd.f32 %v3826_v4, %v379_v13 }
  0x3d   : > { %v426_v35 = vmax.f32 %v3877_v16, 0.0  ;;  %v424_v37 = vmax.f32 %v3880_v17, 0.0  ;;  %v430_v41 = vmax.f32 %v3883_v20, 0.0  ;;  %v3902_v45 = vadd.f32 %v3826_v4, %v385_v22 }
  0x3e   : > { %v360_v47 = vunpack.c.h.bf16 %v3843_v24  ;;  %v427_v53 = vmax.f32 %v3892_v31, 0.0  ;;  %v425_v54 = vmax.f32 %v3895_v32, 0.0  ;;  %v383_v2 = vmul.f32 %v3822_v63, %v357_v56 }
  0x86   : > { %v487_v43 = vpop.permute.xlu1 %486  ;;  %v467_v44 = vpop.permute.xlu0 %466 }
  0x87   : > { %v560_v49 = vmul.f32 %v487_v43, %v420_v27  ;;  %v556_v50 = vmul.f32 %v467_v44, %v416_v28  ;;  %v423_v27 = vmax.f32 %v403_v0, 0.0  ;;  %v421_v28 = vmax.f32 %v401_v1, 0.0 }
  0x88   : > { %v428_v43 = vmax.f32 %v3886_v21, 0.0  ;;  %v431_v1 = vmax.f32 %v3902_v45, 0.0  ;;  %v3553_v45 = vld [vmem:[%s4396_s5 + $0x150] sm:$0xff]  }
  0x89   : > { %v3080_v57 = vpack.c.bf16 %v560_v49, %v560_v49  ;;  %v3076_v58 = vpack.c.bf16 %v556_v50, %v556_v50 }
  0x8a   : > { %v497_v61 = vpop.permute.xlu1 %496  ;;  %v477_v62 = vpop.permute.xlu0 %476 }
  0x8b   : > { %660 = vst [vmem:[#allocation2 + $0x18] sm:$0xf] %v3080_v57  ;;  %656 = vst [vmem:[#allocation2 + $0x8] sm:$0xf] %v3076_v58  ;;  %v562_v5 = vmul.f32 %v497_v61, %v422_v51  ;;  %v558_v6 = vmul.f32 %v477_v62, %v418_v52 }
  0x8d   : > { %v3082_v14 = vpack.c.bf16 %v562_v5, %v562_v5  ;;  %v3078_v15 = vpack.c.bf16 %v558_v6, %v558_v6  ;;  %v387_v5 = vmul.f32 %v3822_v63, %v361_v23 }
  0x8e   : > { %v482_v18 = vpop.permute.xlu1 %481  ;;  %v472_v19 = vpop.permute.xlu0 %471 }
  0x8f   : > { %662 = vst [vmem:[#allocation2 + $0x20] sm:$0xf] %v3082_v14  ;;  %658 = vst [vmem:[#allocation2 + $0x10] sm:$0xf] %v3078_v15  ;;  %v559_v25 = vmul.f32 %v482_v18, %v419_v7  ;;  %v557_v26 = vmul.f32 %v472_v19, %v417_v8 }
  0x91   : > { %v3079_v33 = vpack.c.bf16 %v559_v25, %v559_v25  ;;  %v3077_v34 = vpack.c.bf16 %v557_v26, %v557_v26  ;;  %v3921_v25 = vadd.f32 %v3826_v4, %v383_v2 }
  0x92   : > { %v502_v39 = vpop.permute.xlu1 %501  ;;  %v492_v40 = vpop.permute.xlu0 %491  ;;  %v1488_v44 = vld [vmem:[#allocation2 + $0x8] sm:$0xf]  ;;  %v1492_v46 = vld [vmem:[#allocation2 + $0x18] sm:$0xf] }
  0x93   : > { %659 = vst [vmem:[#allocation2 + $0x14] sm:$0x1] %v3079_v33  ;;  %657 = vst [vmem:[#allocation2 + $0xc] sm:$0x1] %v3077_v34  ;;  %v563_v48 = vmul.f32 %v502_v39, %v423_v27  ;;  %v561_v49 = vmul.f32 %v492_v40, %v421_v28  ;;  %v1505_v50 = vshrl.u32 %v1488_v44, 16  ;;  %v1508_v51 = vshll.u32 %v1488_v44, 16 }
  0x94   : > { %v3905_v52 = vld [vmem:[#allocation2 + $0x8] sm:$0xf]  ;;  %v1533_v55 = vshrl.u32 %v1492_v46, 16  ;;  %v1536_v57 = vshll.u32 %v1492_v46, 16  ;;  %v386_v27 = vmul.f32 %v3822_v63, %v360_v47  ;;  %v429_v21 = vmax.f32 %v3921_v25, 0.0 }
  0x95   : > { %v3083_v58 = vpack.c.bf16 %v563_v48, %v563_v48  ;;  %v3081_v59 = vpack.c.bf16 %v561_v49, %v561_v49  ;;  %v1507_v60 = vrot.slane %v1505_v50, 4  ;;  %v1510_v61 = vrot.slane %v1508_v51, 5  ;;  %v3551_v25 = vld [vmem:[%s4396_s5 + $0x148] sm:$0xff]  }
  0x96   : > { %v462_v62 = vpop.permute.xlu1 %461  ;;  %v457_v24 = vpop.permute.xlu0 %456  ;;  %v1490_v0 = vld [vmem:[#allocation2 + $0x10] sm:$0xf]  ;;  %v1494_v3 = vld [vmem:[#allocation2 + $0x20] sm:$0xf]  ;;  %v724_v6 = vshrl.u32 %v3905_v52, 16  ;;  %v1535_v10 = vrot.slane %v1533_v55, 4 }
  0x97   : > { %663 = vst [vmem:[#allocation2 + $0x24] sm:$0x1] %v3083_v58  ;;  %661 = vst [vmem:[#allocation2 + $0x1c] sm:$0x1] %v3081_v59  ;;  %v555_v7 = vmul.f32 %v462_v62, %v415_v29  ;;  %v554_v8 = vmul.f32 %v457_v24, %v414_v30  ;;  %v1519_v9 = vshrl.u32 %v1490_v0, 16  ;;  %v1511_v11 = vor.u32 %v1510_v61, %v1507_v60 }
  0x98   : > { %v1522_v12 = vshll.u32 %v1490_v0, 16  ;;  %v1538_v13 = vrot.slane %v1536_v57, 5  ;;  %v1547_v14 = vshrl.u32 %v1494_v3, 16  ;;  %v727_v56 = vshll.u32 %v3905_v52, 16 }
  0x99   : > { %v3075_v15 = vpack.c.bf16 %v555_v7, %v555_v7  ;;  %v3074_v16 = vpack.c.bf16 %v554_v8, %v554_v8  ;;  %v1521_v42 = vrot.slane %v1519_v9, 4  ;;  %v1550_v26 = vshll.u32 %v1494_v3, 16 }
  0x9a   : > { %v517_v17 = vpop.permute.xlu1 %516  ;;  %v507_v18 = vpop.permute.xlu0 %506  ;;  %v3916_v19 = vld [vmem:[#allocation2 + $0xc] sm:$0x1]  ;;  %v3918_v22 = vld [vmem:[#allocation2 + $0x14] sm:$0x1]  ;;  %v1524_v23 = vrot.slane %v1522_v12, 5  ;;  %v1512_v39 = vrot.slane %v1511_v11, 4  ;;  %v1539_v44 = vor.u32 %v1538_v13, %v1535_v10  ;;  %v3937_v58 = vadd.f32 %v3826_v4, %v387_v5 }
  0x9b   : > { %655 = vst [vmem:[#allocation2 + $0x4] sm:$0x1] %v3075_v15  ;;  %654 = vst [vmem:[#allocation2] sm:$0xf] %v3074_v16  ;;  %v566_v28 = vmul.f32 %v517_v17, %v426_v35  ;;  %v564_v29 = vmul.f32 %v507_v18, %v424_v37  ;;  %v1514_v30 = vshll.u32 %v3916_v19, 16  ;;  %v1528_v33 = vshll.u32 %v3918_v22, 16 }
  0x9c   : > { %v1525_v40 = vor.u32 %v1524_v23, %v1521_v42  ;;  %v1549_v46 = vrot.slane %v1547_v14, 4  ;;  %v1552_v57 = vrot.slane %v1550_v26, 5  ;;  %v3940_v59 = vadd.f32 %v3826_v4, %v386_v27  ;;  %v3965_v42 = vld [vmem:[#allocation2 + $0xc] sm:$0x1]  ;;  %v3977_v27 = vld [vmem:[#allocation2 + $0x10] sm:$0xf] }
  0x9d   : > { %v3086_v48 = vpack.c.bf16 %v566_v28, %v566_v28  ;;  %v3084_v63 = vpack.c.bf16 %v564_v29, %v564_v29  ;;  %v1516_v47 = vrot.slane %v1514_v30, 5  ;;  %v1530_v49 = vrot.slane %v1528_v33, 5 }
  0x9e   : > { %v537_v35 = vpop.permute.xlu1 %536  ;;  %v527_v37 = vpop.permute.xlu0 %526  ;;  %v1526_v50 = vrot.slane %v1525_v40, 4  ;;  %v3932_v51 = vld [vmem:[#allocation2 + $0x1c] sm:$0x1]  ;;  %v3934_v55 = vld [vmem:[#allocation2 + $0x24] sm:$0x1]  ;;  %v1540_v2 = vrot.slane %v1539_v44, 4  ;;  %v1553_v3 = vor.u32 %v1552_v57, %v1549_v46 }
  0x9f   : > { %666 = vst [vmem:[#allocation2 + $0x30] sm:$0xf] %v3086_v48  ;;  %664 = vst [vmem:[#allocation2 + $0x28] sm:$0xf] %v3084_v63  ;;  %v570_v60 = vmul.f32 %v537_v35, %v430_v41  ;;  %v568_v61 = vmul.f32 %v527_v37, %v428_v43  ;;  %v1517_v62 = vsel %vm3928_vm2, %v1512_v39, %v1516_v47  ;;  %v1542_v24 = vshll.u32 %v3932_v51, 16 }
  0xa0   : > { %v1531_v0 = vsel %vm3928_vm2, %v1526_v50, %v1530_v49  ;;  %v1556_v4 = vshll.u32 %v3934_v55, 16  ;;  %v1554_v43 = vrot.slane %v1553_v3, 4  ;;  %v726_v12 = vrot.slane %v724_v6, 4  ;;  %v3981_v44 = vld [vmem:[#allocation2 + $0x14] sm:$0x1] }
  0xa1   : > { %v3090_v5 = vpack.c.bf16 %v570_v60, %v570_v60  ;;  %v3088_v7 = vpack.c.bf16 %v568_v61, %v568_v61  ;;  %v2931_v8 = vcombine.low %v1517_v62, %v1531_v0  ;;  %v1544_v20 = vrot.slane %v1542_v24, 5  ;;  %v3986_v47 = vld [vmem:[#allocation2 + $0x18] sm:$0xf] }
  0xa2   : > { %v522_v41 = vpop.permute.xlu1 %521  ;;  %v512_v9 = vpop.permute.xlu0 %511  ;;  %v1558_v10 = vrot.slane %v1556_v4, 5  ;;  %v3953_v11 = vld [vmem:[#allocation2] sm:$0xf]  ;;  %v3963_v16 = vld [vmem:[#allocation2 + $0x4] sm:$0x1]  ;;  %v729_v32 = vrot.slane %v727_v56, 5 }
  0xa3   : > { %670 = vst [vmem:[#allocation2 + $0x40] sm:$0xf] %v3090_v5  ;;  %668 = vst [vmem:[#allocation2 + $0x38] sm:$0xf] %v3088_v7  ;;  %v567_v13 = vmul.f32 %v522_v41, %v427_v53  ;;  %v565_v14 = vmul.f32 %v512_v9, %v425_v54  ;;  %3337 = vmatprep.mubr.bf16.mxu0 %v2931_v8  ;;  %v1545_v15 = vsel %vm3928_vm2, %v1540_v2, %v1544_v20  ;;  %v4000_v8 = vld [vmem:[#allocation2 + $0x20] sm:$0xf] }
  0xa4   : > { %v710_v17 = vshrl.u32 %v3953_v11, 16  ;;  %v1559_v6 = vsel %vm3928_vm2, %v1554_v43, %v1558_v10  ;;  %v713_v18 = vshll.u32 %v3953_v11, 16  ;;  %v719_v31 = vshll.u32 %v3963_v16, 16  ;;  %v4006_v43 = vld [vmem:[#allocation2 + $0x24] sm:$0x1] }
  0xa5   : > { %v3087_v53 = vpack.c.bf16 %v567_v13, %v567_v13  ;;  %v3085_v54 = vpack.c.bf16 %v565_v14, %v565_v14  ;;  %v2932_v23 = vcombine.low %v1545_v15, %v1559_v6  ;;  %v433_v30 = vmax.f32 %v3937_v58, 0.0  ;;  %v3555_v15 = vld [vmem:[%s4396_s5 + $0x158] sm:$0xff]  }
  0xa6   : > { %v712_v26 = vrot.slane %v710_v17, 4  ;;  %v542_v28 = vpop.permute.xlu1 %541  ;;  %v532_v29 = vpop.permute.xlu0 %531  ;;  %v715_v33 = vrot.slane %v713_v18, 5  ;;  %v730_v39 = vor.u32 %v729_v32, %v726_v12  ;;  %v733_v40 = vshll.u32 %v3965_v42, 16  ;;  %v4011_v17 = vld [vmem:[#allocation2 + $0x28] sm:$0xf] }
  0xa7   : > { %667 = vst [vmem:[#allocation2 + $0x34] sm:$0x1] %v3087_v53  ;;  %665 = vst [vmem:[#allocation2 + $0x2c] sm:$0x1] %v3085_v54  ;;  %v571_v56 = vmul.f32 %v542_v28, %v431_v1  ;;  %v569_v46 = vmul.f32 %v532_v29, %v429_v21  ;;  %3338 = vmatmul.mubr.bf16.vlgmr.msra.gmra.mrb[0].mxu0 %v2932_v23  ;;  %v432_v48 = vmax.f32 %v3940_v59, 0.0  ;;  %v721_v63 = vrot.slane %v719_v31, 5 }
  0xa8   : > { %3346 = vmatpush3.bf16.msra.mxu0 %v3788_v36  ;;  %v716_v49 = vor.u32 %v715_v33, %v712_v26  ;;  %v731_v35 = vrot.slane %v730_v39, 4  ;;  %v735_v37 = vrot.slane %v733_v40, 5  ;;  %v738_v50 = vshrl.u32 %v3977_v27, 16  ;;  %v3993_v1 = vld [vmem:[#allocation2 + $0x1c] sm:$0x1]  ;;  %v3557_v40 = vld [vmem:[%s4396_s5 + $0x160] sm:$0xff]  }
  0xa9   : > { %v3091_v57 = vpack.c.bf16 %v571_v56, %v571_v56  ;;  %v3089_v58 = vpack.c.bf16 %v569_v46, %v569_v46  ;;  %3347 = vmatprep.subr.bf16.mxu0 %v3551_v25  ;;  %v741_v59 = vshll.u32 %v3977_v27, 16  ;;  %v747_v60 = vshll.u32 %v3981_v44, 16 }
  0xaa   : > { %v552_v61 = vpop.permute.xlu1 %551  ;;  %v547_v36 = vpop.permute.xlu0 %546  ;;  %v717_v62 = vrot.slane %v716_v49, 4  ;;  %v736_v24 = vsel %vm3928_vm2, %v731_v35, %v735_v37  ;;  %v740_v0 = vrot.slane %v738_v50, 4  ;;  %v752_v2 = vshrl.u32 %v3986_v47, 16 }
  0xab   : > { %671 = vst [vmem:[#allocation2 + $0x44] sm:$0x1] %v3091_v57  ;;  %669 = vst [vmem:[#allocation2 + $0x3c] sm:$0x1] %v3089_v58  ;;  %v573_v3 = vmul.f32 %v552_v61, %v433_v30  ;;  %v572_v4 = vmul.f32 %v547_v36, %v432_v48  ;;  %v743_v5 = vrot.slane %v741_v59, 5  ;;  %v749_v7 = vrot.slane %v747_v60, 5 }
  0xac   : > { %3348 = vmatpush3.bf16.msra.mxu0 %v3551_v25  ;;  %v722_v20 = vsel %vm3928_vm2, %v717_v62, %v721_v63  ;;  %v754_v41 = vrot.slane %v752_v2, 4  ;;  %v755_v9 = vshll.u32 %v3986_v47, 16  ;;  %v761_v21 = vshll.u32 %v3993_v1, 16  ;;  %v1496_v25 = vld [vmem:[#allocation2 + $0x28] sm:$0xf] }
  0xad   : > { %v3093_v10 = vpack.c.bf16 %v573_v3, %v573_v3  ;;  %v3092_v12 = vpack.c.bf16 %v572_v4, %v572_v4  ;;  %3349 = vmatprep.subr.bf16.mxu0 %v3553_v45  ;;  %v2827_v13 = vcombine.low %v722_v20, %v736_v24  ;;  %v744_v14 = vor.u32 %v743_v5, %v740_v0  ;;  %v1498_v63 = vld [vmem:[#allocation2 + $0x30] sm:$0xf]  ;;  %v3556_v57 = vld [vmem:[%s4396_s5 + $0x8] sm:$0xff]  }
  0xae   : > { %v757_v6 = vrot.slane %v755_v9, 5  ;;  %v763_v18 = vrot.slane %v761_v21, 5  ;;  %v4013_v31 = vld [vmem:[#allocation2 + $0x2c] sm:$0x1]  ;;  %v766_v53 = vshrl.u32 %v4000_v8, 16  ;;  %v769_v54 = vshll.u32 %v4000_v8, 16 }
  0xaf   : > { %673 = vst [vmem:[#allocation2 + $0x4c] sm:$0x1] %v3093_v10  ;;  %672 = vst [vmem:[#allocation2 + $0x48] sm:$0xf] %v3092_v12  ;;  %3241 = vmatprep.mubr.bf16.mxu1 %v2827_v13  ;;  %v745_v32 = vrot.slane %v744_v14, 4  ;;  %v775_v23 = vshll.u32 %v4006_v43, 16 }
  0xb0   : > { %3350 = vmatpush3.bf16.msra.mxu0 %v3553_v45  ;;  %v758_v26 = vor.u32 %v757_v6, %v754_v41  ;;  %v780_v28 = vshrl.u32 %v4011_v17, 16  ;;  %v783_v29 = vshll.u32 %v4011_v17, 16  ;;  %v789_v30 = vshll.u32 %v4013_v31, 16  ;;  %v4021_v33 = vld [vmem:[#allocation2 + $0x2c] sm:$0x1] }
  0xb1   : > { %v750_v39 = vsel %vm3928_vm2, %v745_v32, %v749_v7  ;;  %3351 = vmatprep.subr.bf16.mxu0 %v3555_v15  ;;  %v768_v56 = vrot.slane %v766_v53, 4  ;;  %v771_v46 = vrot.slane %v769_v54, 5  ;;  %v777_v48 = vrot.slane %v775_v23, 5  ;;  %v4032_v61 = vld [vmem:[#allocation2 + $0x30] sm:$0xf]  ;;  %v3559_v20 = vld [vmem:[%s4396_s5 + $0x168] sm:$0xff]  }
  0xb2   : > { %v759_v49 = vrot.slane %v758_v26, 4  ;;  %v782_v35 = vrot.slane %v780_v28, 4  ;;  %v785_v37 = vrot.slane %v783_v29, 5  ;;  %v791_v50 = vrot.slane %v789_v30, 5  ;;  %v4036_v24 = vld [vmem:[#allocation2 + $0x34] sm:$0x1] }
  0xb3   : > { %v772_v58 = vor.u32 %v771_v46, %v768_v56  ;;  %v1561_v45 = vshrl.u32 %v1496_v25, 16  ;;  %v1564_v59 = vshll.u32 %v1496_v25, 16  ;;  %v1570_v60 = vshll.u32 %v4021_v33, 16  ;;  %v4041_v41 = vld [vmem:[#allocation2 + $0x38] sm:$0xf]  ;;  %v3558_v53 = vld [vmem:[%s4396_s5 + $0x10] sm:$0xff]  }
  0xb4   : > { %v764_v36 = vsel %vm3928_vm2, %v759_v49, %v763_v18  ;;  %3352 = vmatpush3.bf16.msra.mxu0 %v3555_v15  ;;  %v786_v62 = vor.u32 %v785_v37, %v782_v35  ;;  %v1575_v0 = vshrl.u32 %v1498_v63, 16  ;;  %v1578_v2 = vshll.u32 %v1498_v63, 16  ;;  %v4043_v13 = vld [vmem:[#allocation2 + $0x34] sm:$0x1]  ;;  %v4055_v23 = vld [vmem:[#allocation2 + $0x3c] sm:$0x1] }
  0xb5   : > { %v2828_v3 = vcombine.low %v750_v39, %v764_v36  ;;  %3353 = vmatprep.subr.bf16.mxu0 %v3557_v40  ;;  %v773_v4 = vrot.slane %v772_v58, 4  ;;  %v1563_v5 = vrot.slane %v1561_v45, 4  ;;  %v1566_v7 = vrot.slane %v1564_v59, 5  ;;  %v1500_v26 = vld [vmem:[#allocation2 + $0x38] sm:$0xf]  ;;  %v3562_v56 = vld [vmem:[%s4396_s5 + $0x170] sm:$0xff]  }
  0xb6   : > { %v787_v9 = vrot.slane %v786_v62, 4  ;;  %v1572_v21 = vrot.slane %v1570_v60, 5  ;;  %v1577_v10 = vrot.slane %v1575_v0, 4  ;;  %v1580_v12 = vrot.slane %v1578_v2, 5  ;;  %v1502_v39 = vld [vmem:[#allocation2 + $0x40] sm:$0xf] }
  0xb7   : > { %3242 = vmatmul.mubr.bf16.vlgmr.msra.gmra.mrb[0].mxu1 %v2828_v3  ;;  %v1567_v14 = vor.u32 %v1566_v7, %v1563_v5  ;;  %v1584_v15 = vshll.u32 %v4036_v24, 16  ;;  %v794_v6 = vshrl.u32 %v4032_v61, 16  ;;  %v778_v18 = vsel %vm3928_vm2, %v773_v4, %v777_v48  ;;  %v4063_v49 = vld [vmem:[#allocation2 + $0x3c] sm:$0x1]  ;;  %v4071_v36 = vld [vmem:[#allocation2 + $0x44] sm:$0x1] }
  0xb8   : > { %3250 = vmatpush3.bf16.msra.mxu1 %v3797_v38  ;;  %v792_v32 = vsel %vm3928_vm2, %v787_v9, %v791_v50  ;;  %v1581_v54 = vor.u32 %v1580_v12, %v1577_v10  ;;  %3354 = vmatpush3.bf16.msra.mxu0 %v3557_v40  ;;  %v797_v25 = vshll.u32 %v4032_v61, 16  ;;  %v803_v40 = vshll.u32 %v4043_v13, 16  ;;  %v3560_v3 = vld [vmem:[%s4396_s5 + $0x18] sm:$0xff]  }
  0xb9   : > { %3251 = vmatprep.subr.bf16.mxu1 %v3556_v57  ;;  %v2829_v28 = vcombine.low %v778_v18, %v792_v32  ;;  %v1568_v38 = vrot.slane %v1567_v14, 4  ;;  %v1586_v29 = vrot.slane %v1584_v15, 5  ;;  %3355 = vmatprep.subr.bf16.mxu0 %v3559_v20  ;;  %v796_v30 = vrot.slane %v794_v6, 4  ;;  %v1770_v32 = vld [vmem:[#allocation2 + $0x8] sm:$0xe] }
  0xba   : > { %v1582_v46 = vrot.slane %v1581_v54, 4  ;;  %v799_v48 = vrot.slane %v797_v25, 5  ;;  %v808_v63 = vshrl.u32 %v4041_v41, 16  ;;  %v811_v37 = vshll.u32 %v4041_v41, 16  ;;  %v3563_v54 = vld [vmem:[%s4396_s5 + $0x20] sm:$0xff]  }
  0xbb   : > { %3245 = vmatprep.mubr.bf16.mxu1 %v2829_v28  ;;  %v1573_v35 = vsel %vm3928_vm2, %v1568_v38, %v1572_v21  ;;  %v817_v50 = vshll.u32 %v4055_v23, 16  ;;  %v1589_v58 = vshrl.u32 %v1500_v26, 16  ;;  %v1592_v62 = vshll.u32 %v1500_v26, 16  ;;  %v1771_v38 = vld [vmem:[#allocation2 + $0x10] sm:$0xe] }
  0xbc   : > { %3252 = vmatpush3.bf16.msra.mxu1 %v3556_v57  ;;  %v1587_v45 = vsel %vm3928_vm2, %v1582_v46, %v1586_v29  ;;  %v800_v59 = vor.u32 %v799_v48, %v796_v30  ;;  %v810_v60 = vrot.slane %v808_v63, 4  ;;  %3356 = vmatpush3.bf16.msra.mxu0 %v3559_v20  ;;  %v813_v2 = vrot.slane %v811_v37, 5  ;;  %v3564_v57 = vld [vmem:[%s4396_s5 + $0x178] sm:$0xff]  }
  0xbd   : > { %3253 = vmatprep.subr.bf16.mxu1 %v3558_v53  ;;  %v2933_v0 = vcombine.low %v1573_v35, %v1587_v45  ;;  %v1591_v4 = vrot.slane %v1589_v58, 4  ;;  %3357 = vmatprep.subr.bf16.mxu0 %v3562_v56  ;;  %v805_v5 = vrot.slane %v803_v40, 5  ;;  %v1594_v7 = vrot.slane %v1592_v62, 5  ;;  %v3565_v45 = vld [vmem:[%s4396_s5 + $0x28] sm:$0xff]   ;;  %v1772_v62 = vld [vmem:[#allocation2 + $0x18] sm:$0xe] }
  0xbe   : > { %v1598_v9 = vshll.u32 %v4063_v49, 16  ;;  %v1603_v21 = vshrl.u32 %v1502_v39, 16  ;;  %v814_v20 = vor.u32 %v813_v2, %v810_v60  ;;  %v819_v10 = vrot.slane %v817_v50, 5  ;;  %v1106_v2 = vld [vmem:[#allocation2 + $0x10] sm:$0xe] }
  0xbf   : > { %3341 = vmatprep.mubr.bf16.mxu0 %v2933_v0  ;;  %v1606_v12 = vshll.u32 %v1502_v39, 16  ;;  %v1612_v14 = vshll.u32 %v4071_v36, 16  ;;  %v801_v15 = vrot.slane %v800_v59, 4  ;;  %v1595_v6 = vor.u32 %v1594_v7, %v1591_v4  ;;  %v1773_v0 = vld [vmem:[#allocation2 + $0x20] sm:$0xe]  ;;  %v3567_v4 = vld [vmem:[%s4396_s5 + $0x30] sm:$0xff]  }
  0xc0   : > { %3254 = vmatpush3.bf16.msra.mxu1 %v3558_v53  ;;  %v1605_v18 = vrot.slane %v1603_v21, 4  ;;  %3358 = vmatpush3.bf16.msra.mxu0 %v3562_v56  ;;  %v815_v25 = vrot.slane %v814_v20, 4  ;;  %v1600_v26 = vrot.slane %v1598_v9, 5  ;;  %v4087_v53 = vld [vmem:[%s4396_s5 + $0x180] sm:$0xff]   ;;  %v1796_v29 = vrot.slane %v3916_v19, 5 }
  0xc1   : > { %3255 = vmatprep.subr.bf16.mxu1 %v3560_v3  ;;  %v1608_v28 = vrot.slane %v1606_v12, 5  ;;  %3359 = vmatprep.subr.bf16.mxu0 %v3564_v57  ;;  %v1800_v30 = vrot.slane %v3918_v22, 5  ;;  %v806_v39 = vsel %vm3928_vm2, %v801_v15, %v805_v5  ;;  %v1596_v46 = vrot.slane %v1595_v6, 4  ;;  %v1774_v21 = vld [vmem:[#allocation2 + $0x28] sm:$0xe] }
  0xc2   : > { %v820_v56 = vsel %vm3928_vm2, %v815_v25, %v819_v10  ;;  %v1614_v40 = vrot.slane %v1612_v14, 5  ;;  %v2943_v19 = vrot.slane %v1770_v32, 9  ;;  %v2944_v37 = vrot.slane %v1771_v38, 9 }
  0xc3   : > { %v1609_v48 = vor.u32 %v1608_v28, %v1605_v18  ;;  %v2830_v35 = vcombine.low %v806_v39, %v820_v56  ;;  %v1601_v22 = vsel %vm3928_vm2, %v1596_v46, %v1600_v26  ;;  %v2839_v58 = vcombine.low %v3953_v11, %v3905_v52  ;;  %v1108_v26 = vld [vmem:[#allocation2 + $0x20] sm:$0xe]  ;;  %v1109_v28 = vld [vmem:[#allocation2 + $0x28] sm:$0xe] }
  0xc4   : > { %3256 = vmatpush3.bf16.msra.mxu1 %v3560_v3  ;;  %3360 = vmatpush3.bf16.msra.mxu0 %v3564_v57  ;;  %v1797_v59 = vsel %vm4097_vm5, %v2943_v19, %v1796_v29  ;;  %v1801_v60 = vsel %vm4097_vm5, %v2944_v37, %v1800_v30  ;;  %v1804_v3 = vrot.slane %v3932_v51, 5  ;;  %v1808_v52 = vrot.slane %v3934_v55, 5  ;;  %v1107_v57 = vld [vmem:[#allocation2 + $0x18] sm:$0xe]  ;;  %v1775_v51 = vld [vmem:[#allocation2 + $0x30] sm:$0xe] }
  0xc5   : > { %v1610_v50 = vrot.slane %v1609_v48, 4  ;;  %3257 = vmatprep.subr.bf16.mxu1 %v3563_v54  ;;  %3369 = vmatprep.subr.bf16.mxu0 %v4087_v53  ;;  %v1141_v5 = vrot.slane %v3981_v44, 5  ;;  %v1145_v7 = vrot.slane %v3993_v1, 5  ;;  %v2967_v20 = vcombine.low %v1797_v59, %v1801_v60  ;;  %v1776_v30 = vld [vmem:[#allocation2 + $0x38] sm:$0xe]  ;;  %v3568_v46 = vld [vmem:[%s4396_s5 + $0x188] sm:$0xff]  }
  0xc6   : > { %3246 = vmatmul.mubr.bf16.gmra.mrb[4].mxu1 %v2830_v35  ;;  %v1812_v55 = vrot.slane %v4021_v33, 5  ;;  %v1816_v10 = vrot.slane %v4036_v24, 5  ;;  %v2853_v12 = vrot.slane %v1106_v2, 9  ;;  %v2854_v14 = vrot.slane %v1107_v57, 9  ;;  %v1777_v48 = vld [vmem:[#allocation2 + $0x40] sm:$0xe] }
  0xc7   : > { %v1615_v11 = vsel %vm3928_vm2, %v1610_v50, %v1614_v40  ;;  %3265 = vmatprep.mubr.bf16.mxu1 %v2839_v58  ;;  %v2945_v15 = vrot.slane %v1772_v62, 9  ;;  %v2946_v6 = vrot.slane %v1773_v0, 9  ;;  %v2947_v44 = vrot.slane %v1774_v21, 9  ;;  %v3570_v59 = vld [vmem:[%s4396_s5 + $0x190] sm:$0xff]   ;;  %v1104_v60 = vld [vmem:[#allocation2] sm:$0xe] }
  0xc8   : > { %v2934_v9 = vcombine.low %v1601_v22, %v1615_v11  ;;  %3258 = vmatpush3.bf16.msra.mxu1 %v3563_v54  ;;  %v2948_v18 = vrot.slane %v1775_v51, 9  ;;  %v4126_v1 = vsel %vm4097_vm5, %v2853_v12, %v1141_v5  ;;  %v4130_v32 = vsel %vm4097_vm5, %v2854_v14, %v1145_v7  ;;  %v3569_v54 = vld [vmem:[%s4396_s5 + $0x38] sm:$0xff]   ;;  %v3577_v7 = vld [vmem:[%s4396_s5 + $0x1a0] sm:$0xff]   ;;  %v3580_v51 = vld [vmem:[%s4396_s5 + $0x1a8] sm:$0xff]  }
  0xc9   : > { %3259 = vmatprep.subr.bf16.mxu1 %v3565_v45  ;;  %v1805_v33 = vsel %vm4097_vm5, %v2945_v15, %v1804_v3  ;;  %v1809_v24 = vsel %vm4097_vm5, %v2946_v6, %v1808_v52  ;;  %v2876_v25 = vcombine.low %v4126_v1, %v4130_v32  ;;  %v1813_v38 = vsel %vm4097_vm5, %v2947_v44, %v1812_v55  ;;  %v3576_v3 = vld [vmem:[%s4396_s5 + $0x88] sm:$0xff]   ;;  %v2151_v55 = vld [vmem:[#allocation2 + $0x10] sm:$0xf]  ;;  %v3584_v14 = vld [vmem:[%s4396_s5 + $0x1b8] sm:$0xff]  }
  0xca   : > { %3342 = vmatmul.mubr.bf16.gmra.mrb[4].mxu0 %v2934_v9  ;;  %v1817_v29 = vsel %vm4097_vm5, %v2948_v18, %v1816_v10  ;;  %v1149_v39 = vrot.slane %v4006_v43, 5  ;;  %v2968_v56 = vcombine.low %v1805_v33, %v1809_v24  ;;  %v2855_v40 = vrot.slane %v1108_v26, 9  ;;  %v3572_v43 = vld [vmem:[%s4396_s5 + $0x80] sm:$0xff]   ;;  %v2153_v10 = vld [vmem:[#allocation2 + $0x18] sm:$0xf]  ;;  %v3585_v12 = vld [vmem:[%s4396_s5 + $0xa8] sm:$0xff]  }
  0xcb   : > { %3361 = vmatprep.mubr.bf16.mxu0 %v2967_v20  ;;  %v2856_v35 = vrot.slane %v1109_v28, 9  ;;  %v1153_v19 = vrot.slane %v4013_v31, 5  ;;  %v2969_v37 = vcombine.low %v1813_v38, %v1817_v29  ;;  %v1820_v22 = vrot.slane %v4063_v49, 5  ;;  %v3581_v20 = vld [vmem:[%s4396_s5 + $0x98] sm:$0xff]   ;;  %v3588_v33 = vld [vmem:[%s4396_s5 + $0xb0] sm:$0xff]  }
  0xcc   : > { %3260 = vmatpush3.bf16.msra.mxu1 %v3565_v45  ;;  %v1824_v50 = vrot.slane %v4071_v36, 5  ;;  %v4157_v58 = vsel %vm4097_vm5, %v2855_v40, %v1149_v39  ;;  %v2949_v31 = vrot.slane %v1776_v30, 9  ;;  %v2950_v49 = vrot.slane %v1777_v48, 9  ;;  %v4218_v24 = vld [vmem:[#allocation2 + $0x1c] sm:$0x1]  ;;  %v3590_v48 = vld [vmem:[%s4396_s5 + $0x1c8] sm:$0xff]  }
  0xcd   : > { %3261 = vmatprep.subr.bf16.mxu1 %v3567_v4  ;;  %v4161_v45 = vsel %vm4097_vm5, %v2856_v35, %v1153_v19  ;;  %v2841_v2 = vcombine.low %v4000_v8, %v4011_v17  ;;  %v1133_v52 = vrot.slane %v3963_v16, 5  ;;  %v2851_v11 = vrot.slane %v1104_v60, 9  ;;  %v3573_v8 = vld [vmem:[#allocation2 + $0x10] ss:$8 sps:$4 sm:$0xff]   ;;  %v4223_v30 = vld [vmem:[#allocation2 + $0x14] sm:$0x1] }
  0xce   : > { %v2877_v36 = vcombine.low %v4157_v58, %v4161_v45  ;;  %v1821_v62 = vsel %vm4097_vm5, %v2949_v31, %v1820_v22  ;;  %v1825_v0 = vsel %vm4097_vm5, %v2950_v49, %v1824_v50  ;;  %v1137_v57 = vrot.slane %v3965_v42, 5  ;;  %v3579_v16 = vld [vmem:[%s4396_s5 + $0x90] sm:$0xff]   ;;  %v3591_v39 = vld [vmem:[%s4396_s5 + $0xb8] sm:$0xff]   ;;  %v3594_v22 = vld [vmem:[%s4396_s5 + $0xc0] sm:$0xff]  }
  0xcf   : > { %v1134_v17 = vsel %vm4097_vm5, %v2851_v11, %v1133_v52  ;;  %v2842_v42 = vcombine.low %v4032_v61, %v4041_v41  ;;  %v3583_v61 = vld [vmem:[%s4396_s5 + $0xa0] sm:$0xff]   ;;  %v3582_v41 = vld [vmem:[%s4396_s5 + $0x1b0] sm:$0xff]   ;;  %v2168_v15 = vshrl.u32 %v2151_v55, 16  ;;  %v2171_v6 = vshll.u32 %v2151_v55, 16  ;;  %v3595_v52 = vld [vmem:[%s4396_s5 + $0x1d8] sm:$0xff]  }
  0xd0   : > { %3262 = vmatpush3.bf16.msra.mxu1 %v3567_v4  ;;  %v2970_v4 = vcombine.low %v1821_v62, %v1825_v0  ;;  %v2182_v44 = vshrl.u32 %v2153_v10, 16  ;;  %v2185_v18 = vshll.u32 %v2153_v10, 16  ;;  %v2177_v35 = vshll.u32 %v4223_v30, 16  ;;  %v3596_v62 = vld [vmem:[%s4396_s5 + $0xc8] sm:$0xff]   ;;  %v1111_v0 = vld [vmem:[#allocation2 + $0x38] sm:$0xe] }
  0xd1   : > { %3263 = vmatprep.subr.bf16.mxu1 %v3569_v54  ;;  %v2170_v26 = vrot.slane %v2168_v15, 4  ;;  %v2173_v28 = vrot.slane %v2171_v6, 5  ;;  %v1110_v11 = vld [vmem:[#allocation2 + $0x30] sm:$0xe]  ;;  %v3597_v58 = vld [vmem:[%s4396_s5 + $0x1e0] sm:$0xff]  }
  0xd2   : > { %3362 = vmatmul.mubr.bf16.vlgmr.msra.gmra.mrb[0].mxu0 %v2968_v56  ;;  %v2184_v38 = vrot.slane %v2182_v44, 4  ;;  %v2187_v29 = vrot.slane %v2185_v18, 5  ;;  %v2191_v56 = vshll.u32 %v4218_v24, 16  ;;  %v2179_v49 = vrot.slane %v2177_v35, 5  ;;  %v3598_v1 = vld [vmem:[%s4396_s5 + $0xd0] sm:$0xff]  }
  0xd3   : > { %3365 = vmatprep.mubr.bf16.mxu0 %v2969_v37  ;;  %3370 = vmatpush3.bf16.msra.mxu0 %v4087_v53  ;;  %v2840_v53 = vcombine.low %v3977_v27, %v3986_v47  ;;  %v3575_v27 = vld [vmem:[%s4396_s5 + $0x198] sm:$0xff]   ;;  %v1105_v47 = vld [vmem:[#allocation2 + $0x8] sm:$0xe]  ;;  %v2174_v40 = vor.u32 %v2173_v28, %v2170_v26  ;;  %v2857_v32 = vrot.slane %v1110_v11, 9  ;;  %v2155_v45 = vld [vmem:[#allocation2 + $0x20] sm:$0xf] }
  0xd4   : > { %3371 = vmatprep.subr.bf16.mxu0 %v3568_v46  ;;  %3264 = vmatpush3.bf16.msra.mxu1 %v3569_v54  ;;  %v2852_v5 = vrot.slane %v1105_v47, 9  ;;  %v3587_v54 = vld [vmem:[%s4396_s5 + $0x1c0] sm:$0xff]   ;;  %v2188_v19 = vor.u32 %v2187_v29, %v2184_v38  ;;  %v3589_v37 = vld [vmem:[#allocation2 + $0x30] ss:$8 sps:$4 sm:$0xff]   ;;  %v2193_v50 = vrot.slane %v2191_v56, 5 }
  0xd5   : > { %3273 = vmatprep.subr.bf16.mxu1 %v3572_v43  ;;  %v2175_v31 = vrot.slane %v2174_v40, 4  ;;  %v2161_v47 = vld [vmem:[#allocation2 + $0x38] sm:$0xf]  ;;  %v4281_v18 = vld [vmem:[#allocation2 + $0x3c] sm:$0x1] }
  0xd6   : > { %v1138_v9 = vsel %vm4097_vm5, %v2852_v5, %v1137_v57  ;;  %v4286_v29 = vld [vmem:[#allocation2 + $0x34] sm:$0x1]  ;;  %v2247_v35 = vshll.u32 %v4281_v18, 16 }
  0xd7   : > { %3372 = vmatpush3.bf16.msra.mxu0 %v3568_v46  ;;  %3266 = vmatmul.mubr.bf16.vlgmr.msra.gmra.mrb[0].mxu1 %v2840_v53  ;;  %v2875_v21 = vcombine.low %v1134_v17, %v1138_v9  ;;  %v3586_v46 = vld [vmem:[#allocation2 + $0x20] ss:$8 sps:$4 sm:$0xff]   ;;  %v1161_v53 = vrot.slane %v4055_v23, 5  ;;  %v1157_v23 = vrot.slane %v4043_v13, 5  ;;  %v2196_v17 = vshrl.u32 %v2155_v45, 16 }
  0xd8   : > { %3373 = vmatprep.subr.bf16.mxu0 %v3570_v59  ;;  %3269 = vmatprep.mubr.bf16.mxu1 %v2841_v2  ;;  %v3592_v2 = vld [vmem:[#allocation2 + $0x40] ss:$8 sps:$4 sm:$0xff]   ;;  %v2475_v34 = vrot.slane %v4286_v29, 5 }
  0xd9   : > { %3274 = vmatpush3.bf16.msra.mxu1 %v3572_v43  ;;  %v3593_v43 = vld [vmem:[%s4396_s5 + $0x1d0] sm:$0xff]   ;;  %v2157_v13 = vld [vmem:[#allocation2 + $0x28] sm:$0xf]  ;;  %v2198_v15 = vrot.slane %v2196_v17, 4 }
  0xda   : > { %3366 = vmatmul.mubr.bf16.gmra.mrb[4].mxu0 %v2970_v4  ;;  %3275 = vmatprep.subr.bf16.mxu1 %v3576_v3  ;;  %v2210_v5 = vshrl.u32 %v2157_v13, 16  ;;  %v3600_v9 = vld [vmem:[%s4396_s5 + $0x1e8] sm:$0xff]  }
  0xdb   : > { %3374 = vmatpush3.bf16.msra.mxu0 %v3570_v59  ;;  %3385 = vmatprep.mubr.bf16.mxu0 %v3573_v8  ;;  %v2189_v59 = vrot.slane %v2188_v19, 4  ;;  %v3599_v8 = vld [vmem:[#allocation2 + $0x8] ss:$8 sps:$4 sm:$0xff]   ;;  %v2163_v19 = vld [vmem:[#allocation2 + $0x40] sm:$0xf] }
  0xdc   : > { %3375 = vmatprep.subr.bf16.mxu0 %v3575_v27  ;;  %v2212_v6 = vrot.slane %v2210_v5, 4 }
  0xdd   : > { %3276 = vmatpush3.bf16.msra.mxu1 %v3576_v3  ;;  %v2194_v60 = vsel %vm3928_vm2, %v2189_v59, %v2193_v50  ;;  %v2180_v3 = vsel %vm3928_vm2, %v2175_v31, %v2179_v49  ;;  %v3604_v50 = vld [vmem:[%s4396_s5 + $0x1f8] sm:$0xff]   ;;  %v2233_v49 = vshll.u32 %v4286_v29, 16 }
  0xde   : > { %3277 = vmatprep.subr.bf16.mxu1 %v3579_v16  ;;  %v3023_v4 = vcombine.low %v2180_v3, %v2194_v60  ;;  %v2252_v60 = vshrl.u32 %v2163_v19, 16 }
  0xdf   : > { %3376 = vmatpush3.bf16.msra.mxu0 %v3575_v27  ;;  %3270 = vmatmul.mubr.bf16.gmra.mrb[4].mxu1 %v2842_v42  ;;  %v2858_v27 = vrot.slane %v1111_v0, 9  ;;  %v2159_v42 = vld [vmem:[#allocation2 + $0x30] sm:$0xf] }
  0xe0   : > { %3377 = vmatprep.subr.bf16.mxu0 %v3577_v7  ;;  %3289 = vmatprep.mubr.bf16.mxu1 %v2875_v21  ;;  %v2199_v21 = vshll.u32 %v2155_v45, 16  ;;  %v2224_v55 = vshrl.u32 %v2159_v42, 16  ;;  %v2227_v10 = vshll.u32 %v2159_v42, 16 }
  0xe1   : > { %3278 = vmatpush3.bf16.msra.mxu1 %v3579_v16  ;;  %v3601_v16 = vld [vmem:[%s4396_s5 + $0xd8] sm:$0xff]  }
  0xe2   : > { %3279 = vmatprep.subr.bf16.mxu1 %v3581_v20  ;;  %v2229_v40 = vrot.slane %v2227_v10, 5  ;;  %v2463_v10 = vrot.slane %v4218_v24, 5 }
  0xe3   : > { %3378 = vmatpush3.bf16.msra.mxu0 %v3577_v7  ;;  %v2213_v7 = vshll.u32 %v2157_v13, 16  ;;  %v2254_v13 = vrot.slane %v2252_v60, 4  ;;  %v3616_v60 = vld [vmem:[%s4396_s5 + $0x228] sm:$0xff]  }
  0xe4   : > { %3379 = vmatprep.subr.bf16.mxu0 %v3580_v51 }
  0xe5   : > { %3280 = vmatpush3.bf16.msra.mxu1 %v3581_v20  ;;  %v2238_v20 = vshrl.u32 %v2161_v47, 16  ;;  %v2215_v44 = vrot.slane %v2213_v7, 5 }
  0xe6   : > { %3281 = vmatprep.subr.bf16.mxu1 %v3583_v61 }
  0xe7   : > { %3380 = vmatpush3.bf16.msra.mxu0 %v3580_v51  ;;  %v2241_v51 = vshll.u32 %v2161_v47, 16  ;;  %v2240_v28 = vrot.slane %v2238_v20, 4 }
  0xe8   : > { %3381 = vmatprep.subr.bf16.mxu0 %v3582_v41 }
  0xe9   : > { %3282 = vmatpush3.bf16.msra.mxu1 %v3583_v61  ;;  %v4273_v61 = vld [vmem:[#allocation2 + $0x2c] sm:$0x1]  ;;  %v2243_v38 = vrot.slane %v2241_v51, 5 }
  0xea   : > { %3283 = vmatprep.subr.bf16.mxu1 %v3585_v12  ;;  %v2219_v26 = vshll.u32 %v4273_v61, 16 }
  0xeb   : > { %3382 = vmatpush3.bf16.msra.mxu0 %v3582_v41  ;;  %v3603_v41 = vld [vmem:[%s4396_s5 + $0xe0] sm:$0xff]   ;;  %v2244_v59 = vor.u32 %v2243_v38, %v2240_v28 }
  0xec   : > { %3383 = vmatprep.subr.bf16.mxu0 %v3584_v14  ;;  %v2221_v31 = vrot.slane %v2219_v26, 5  ;;  %v3611_v38 = vld [vmem:[#allocation2 + $0x18] ss:$8 sps:$4 sm:$0xff]  }
  0xed   : > { %3284 = vmatpush3.bf16.msra.mxu1 %v3585_v12  ;;  %v2165_v12 = vld [vmem:[#allocation2 + $0x48] sm:$0xf] }
  0xee   : > { %3285 = vmatprep.subr.bf16.mxu1 %v3588_v33  ;;  %v2269_v56 = vshll.u32 %v2165_v12, 16 }
  0xef   : > { %3384 = vmatpush3.bf16.msra.mxu0 %v3584_v14  ;;  %v3602_v14 = vld [vmem:[%s4396_s5 + $0x1f0] sm:$0xff]  }
  0xf0   : > { %3393 = vmatprep.subr.bf16.mxu0 %v3587_v54 }
  0xf1   : > { %3286 = vmatpush3.bf16.msra.mxu1 %v3588_v33  ;;  %v4283_v33 = vld [vmem:[#allocation2 + $0x24] sm:$0x1] }
  0xf2   : > { %3386 = vmatmul.mubr.bf16.vlgmr.msra.gmra.mrb[0].mxu0 %v3586_v46  ;;  %3287 = vmatprep.subr.bf16.mxu1 %v3591_v39  ;;  %v3605_v46 = vld [vmem:[%s4396_s5 + $0xe8] sm:$0xff]  }
  0xf3   : > { %3389 = vmatprep.mubr.bf16.mxu0 %v3589_v37  ;;  %3394 = vmatpush3.bf16.msra.mxu0 %v3587_v54  ;;  %v2201_v54 = vrot.slane %v2199_v21, 5  ;;  %v2205_v37 = vshll.u32 %v4283_v33, 16  ;;  %v3608_v21 = vld [vmem:[%s4396_s5 + $0x208] sm:$0xff]  }
  0xf4   : > { %3395 = vmatprep.subr.bf16.mxu0 %v3590_v48 }
  0xf5   : > { %3288 = vmatpush3.bf16.msra.mxu1 %v3591_v39  ;;  %v2266_v39 = vshrl.u32 %v2165_v12, 16  ;;  %v2207_v11 = vrot.slane %v2205_v37, 5 }
  0xf6   : > { %3297 = vmatprep.subr.bf16.mxu1 %v3594_v22 }
  0xf7   : > { %3396 = vmatpush3.bf16.msra.mxu0 %v3590_v48  ;;  %v2226_v48 = vrot.slane %v2224_v55, 4  ;;  %v2268_v0 = vrot.slane %v2266_v39, 4  ;;  %v2434_v55 = vld [vmem:[#allocation2 + $0x18] sm:$0xe] }
  0xf8   : > { %3397 = vmatprep.subr.bf16.mxu0 %v3593_v43  ;;  %3290 = vmatmul.mubr.bf16.vlgmr.msra.gmra.mrb[0].mxu1 %v2876_v25  ;;  %v1162_v25 = vsel %vm4097_vm5, %v2858_v27, %v1161_v53  ;;  %v2271_v53 = vrot.slane %v2269_v56, 5 }
  0xf9   : > { %3293 = vmatprep.mubr.bf16.mxu1 %v2877_v36  ;;  %3298 = vmatpush3.bf16.msra.mxu1 %v3594_v22  ;;  %v1158_v36 = vsel %vm4097_vm5, %v2857_v32, %v1157_v23  ;;  %v2216_v22 = vor.u32 %v2215_v44, %v2212_v6  ;;  %v2230_v3 = vor.u32 %v2229_v40, %v2226_v48  ;;  %v4300_v23 = vld [vmem:[#allocation2 + $0x44] sm:$0x1]  ;;  %v2235_v32 = vrot.slane %v2233_v49, 5  ;;  %v3610_v6 = vld [vmem:[%s4396_s5 + $0x210] sm:$0xff]   ;;  %v2438_v48 = vld [vmem:[#allocation2 + $0x38] sm:$0xe] }
  0xfa   : > { %3390 = vmatmul.mubr.bf16.gmra.mrb[4].mxu0 %v3592_v2  ;;  %3299 = vmatprep.subr.bf16.mxu1 %v3596_v62  ;;  %v2878_v57 = vcombine.low %v1158_v36, %v1162_v25  ;;  %v3607_v2 = vld [vmem:[%s4396_s5 + $0xf0] sm:$0xff]   ;;  %v2245_v25 = vrot.slane %v2244_v59, 4  ;;  %v2272_v47 = vor.u32 %v2271_v53, %v2268_v0  ;;  %v2261_v5 = vshll.u32 %v4300_v23, 16  ;;  %v3615_v49 = vld [vmem:[#allocation2 + $0x38] ss:$8 sps:$4 sm:$0xff]  }
  0xfb   : > { %3398 = vmatpush3.bf16.msra.mxu0 %v3593_v43  ;;  %3409 = vmatprep.mubr.bf16.mxu0 %v3023_v4  ;;  %v2202_v43 = vor.u32 %v2201_v54, %v2198_v15  ;;  %v2217_v4 = vrot.slane %v2216_v22, 4  ;;  %v2433_v15 = vld [vmem:[#allocation2 + $0x10] sm:$0xe]  ;;  %v2459_v44 = vrot.slane %v4223_v30, 5  ;;  %v3036_v54 = vrot.slane %v2434_v55, 9  ;;  %v3618_v0 = vld [vmem:[%s4396_s5 + $0x238] sm:$0xff]  }
  0xfc   : > { %3399 = vmatprep.subr.bf16.mxu0 %v3595_v52  ;;  %v2263_v12 = vrot.slane %v2261_v5, 5  ;;  %v3035_v24 = vrot.slane %v2433_v15, 9  ;;  %v2437_v22 = vld [vmem:[#allocation2 + $0x30] sm:$0xe]  ;;  %v2436_v53 = vld [vmem:[#allocation2 + $0x28] sm:$0xe] }
  0xfd   : > { %3300 = vmatpush3.bf16.msra.mxu1 %v3596_v62  ;;  %v2255_v62 = vshll.u32 %v2163_v19, 16  ;;  %v2203_v27 = vrot.slane %v2202_v43, 4  ;;  %v2222_v45 = vsel %vm3928_vm2, %v2217_v4, %v2221_v31  ;;  %v2464_v39 = vsel %vm4097_vm5, %v3036_v54, %v2463_v10  ;;  %v3614_v43 = vld [vmem:[%s4396_s5 + $0x220] sm:$0xff]   ;;  %v2440_v4 = vld [vmem:[#allocation2 + $0x48] sm:$0xe] }
  0xfe   : > { %3301 = vmatprep.subr.bf16.mxu1 %v3598_v1  ;;  %v2460_v30 = vsel %vm4097_vm5, %v3035_v24, %v2459_v44  ;;  %v2479_v19 = vrot.slane %v4281_v18, 5  ;;  %v3039_v31 = vrot.slane %v2437_v22, 9 }
  0xff   : > { %3400 = vmatpush3.bf16.msra.mxu0 %v3595_v52  ;;  %v2249_v52 = vrot.slane %v2247_v35, 5  ;;  %v2257_v36 = vrot.slane %v2255_v62, 5  ;;  %v2208_v17 = vsel %vm3928_vm2, %v2203_v27, %v2207_v11  ;;  %v3613_v35 = vld [vmem:[%s4396_s5 + $0x218] sm:$0xff]   ;;  %v3059_v37 = vcombine.low %v2460_v30, %v2464_v39  ;;  %v3617_v62 = vld [vmem:[%s4396_s5 + $0x230] sm:$0xff]  }
 0x100   : > { %3401 = vmatprep.subr.bf16.mxu0 %v3597_v58  ;;  %3294 = vmatmul.mubr.bf16.gmra.mrb[4].mxu1 %v2878_v57  ;;  %v2231_v57 = vrot.slane %v2230_v3, 4  ;;  %v3024_v42 = vcombine.low %v2208_v17, %v2222_v45  ;;  %v2476_v59 = vsel %vm4097_vm5, %v3039_v31, %v2475_v34  ;;  %v2435_v3 = vld [vmem:[#allocation2 + $0x20] sm:$0xe]  ;;  %v3038_v11 = vrot.slane %v2436_v53, 9 }
 0x101   : > { %3302 = vmatpush3.bf16.msra.mxu1 %v3598_v1  ;;  %3313 = vmatprep.mubr.bf16.mxu1 %v3599_v8  ;;  %v3606_v1 = vld [vmem:[%s4396_s5 + $0x200] sm:$0xff]   ;;  %v2250_v8 = vsel %vm3928_vm2, %v2245_v25, %v2249_v52  ;;  %v2258_v51 = vor.u32 %v2257_v36, %v2254_v13  ;;  %v2467_v52 = vrot.slane %v4283_v33, 5  ;;  %v3037_v27 = vrot.slane %v2435_v3, 9 }
 0x102   : > { %3303 = vmatprep.subr.bf16.mxu1 %v3601_v16  ;;  %v3042_v25 = vrot.slane %v2440_v4, 9  ;;  %v2439_v13 = vld [vmem:[#allocation2 + $0x40] sm:$0xe]  ;;  %v2483_v33 = vrot.slane %v4300_v23, 5  ;;  %v3631_v23 = vmov 0.0  }
 0x103   : > { %3402 = vmatpush3.bf16.msra.mxu0 %v3597_v58  ;;  %v4305_v58 = vld [vmem:[#allocation2 + $0x4c] sm:$0x1]  ;;  %v2259_v26 = vrot.slane %v2258_v51, 4  ;;  %v3041_v36 = vrot.slane %v2439_v13, 9  ;;  %2659 = vst [vmem:[%s4373_s11] sm:$0xff] %v3631_v23 }
 0x104   : > { %3403 = vmatprep.subr.bf16.mxu0 %v3600_v9  ;;  %v2275_v7 = vshll.u32 %v4305_v58, 16 }
 0x105   : > { %3304 = vmatpush3.bf16.msra.mxu1 %v3601_v16  ;;  %v3609_v16 = vld [vmem:[%s4396_s5 + $0xf8] sm:$0xff]   ;;  %v2264_v56 = vsel %vm3928_vm2, %v2259_v26, %v2263_v12 }
 0x106   : > { %3305 = vmatprep.subr.bf16.mxu1 %v3603_v41 }
 0x107   : > { %3404 = vmatpush3.bf16.msra.mxu0 %v3600_v9  ;;  %v2236_v9 = vsel %vm3928_vm2, %v2231_v57, %v2235_v32  ;;  %v2487_v32 = vrot.slane %v4305_v58, 5  ;;  %v2484_v58 = vsel %vm4097_vm5, %v3041_v36, %v2483_v33 }
 0x108   : > { %3405 = vmatprep.subr.bf16.mxu0 %v3602_v14  ;;  %v3025_v20 = vcombine.low %v2236_v9, %v2250_v8 }
 0x109   : > { %3306 = vmatpush3.bf16.msra.mxu1 %v3603_v41  ;;  %v2273_v41 = vrot.slane %v2272_v47, 4  ;;  %v2488_v47 = vsel %vm4097_vm5, %v3042_v25, %v2487_v32 }
 0x10a   : > { %3307 = vmatprep.subr.bf16.mxu1 %v3605_v46  ;;  %v3062_v57 = vcombine.low %v2484_v58, %v2488_v47 }
 0x10b   : > { %3406 = vmatpush3.bf16.msra.mxu0 %v3602_v14  ;;  %v2277_v14 = vrot.slane %v2275_v7, 5 }
 0x10c   : > { %3407 = vmatprep.subr.bf16.mxu0 %v3604_v50 }
 0x10d   : > { %3308 = vmatpush3.bf16.msra.mxu1 %v3605_v46  ;;  %v2278_v28 = vsel %vm3928_vm2, %v2273_v41, %v2277_v14  ;;  %v3612_v46 = vld [vmem:[#allocation2 + $0x28] ss:$8 sps:$4 sm:$0xff]  }
 0x10e   : > { %3309 = vmatprep.subr.bf16.mxu1 %v3607_v2  ;;  %v3026_v40 = vcombine.low %v2264_v56, %v2278_v28 }
 0x10f   : > { %3408 = vmatpush3.bf16.msra.mxu0 %v3604_v50  ;;  %v3040_v50 = vrot.slane %v2438_v48, 9 }
 0x110   : > { %3417 = vmatprep.subr.bf16.mxu0 %v3606_v1 }
 0x111   : > { %3310 = vmatpush3.bf16.msra.mxu1 %v3607_v2  ;;  %v2480_v18 = vsel %vm4097_vm5, %v3040_v50, %v2479_v19  ;;  %v2471_v2 = vrot.slane %v4273_v61, 5  ;;  %v2468_v61 = vsel %vm4097_vm5, %v3037_v27, %v2467_v52 }
 0x112   : > { %3410 = vmatmul.mubr.bf16.vlgmr.msra.gmra.mrb[0].mxu0 %v3024_v42  ;;  %3311 = vmatprep.subr.bf16.mxu1 %v3609_v16  ;;  %v3061_v29 = vcombine.low %v2476_v59, %v2480_v18 }
 0x113   : > { %3413 = vmatprep.mubr.bf16.mxu0 %v3025_v20  ;;  %3418 = vmatpush3.bf16.msra.mxu0 %v3606_v1 }
 0x114   : > { %3419 = vmatprep.subr.bf16.mxu0 %v3608_v21 }
 0x115   : > { %3312 = vmatpush3.bf16.msra.mxu1 %v3609_v16 }
 0x116   : > { %3441 = vmatprep.subr.bf16.mxu1 %v3606_v1 }
 0x117   : > { %3420 = vmatpush3.bf16.msra.mxu0 %v3608_v21 }
 0x118   : > { %3421 = vmatprep.subr.bf16.mxu0 %v3610_v6  ;;  %3314 = vmatmul.mubr.bf16.vlgmr.msra.gmra.mrb[0].mxu1 %v3611_v38 }
 0x119   : > { %3317 = vmatprep.mubr.bf16.mxu1 %v3612_v46  ;;  %3449 = vmatpush3.bf16.msra.mxu1 %v3606_v1  ;;  %v2472_v1 = vsel %vm4097_vm5, %v3038_v11, %v2471_v2 }
 0x11a   : > { %3414 = vmatmul.mubr.bf16.gmra.mrb[4].mxu0 %v3026_v40  ;;  %3442 = vmatprep.subr.bf16.mxu1 %v3608_v21  ;;  %v3060_v45 = vcombine.low %v2468_v61, %v2472_v1 }
 0x11b   : > { %3422 = vmatpush3.bf16.msra.mxu0 %v3610_v6  ;;  %3433 = vmatprep.mubr.bf16.mxu0 %v3059_v37 }
 0x11c   : > { %3423 = vmatprep.subr.bf16.mxu0 %v3613_v35 }
 0x11d   : > { %3450 = vmatpush3.bf16.msra.mxu1 %v3608_v21 }
 0x11e   : > { %3443 = vmatprep.subr.bf16.mxu1 %v3610_v6 }
 0x11f   : > { %3424 = vmatpush3.bf16.msra.mxu0 %v3613_v35 }
 0x120   : > { %3425 = vmatprep.subr.bf16.mxu0 %v3614_v43  ;;  %3318 = vmatmul.mubr.bf16.gmra.mrb[4].mxu1 %v3615_v49 }
 0x121   : > { %3451 = vmatpush3.bf16.msra.mxu1 %v3610_v6  ;;  %3437 = vmatprep.mubr.bf16.mxu1 %v3061_v29 }
 0x122   : > { %3444 = vmatprep.subr.bf16.mxu1 %v3613_v35 }
 0x123   : > { %3426 = vmatpush3.bf16.msra.mxu0 %v3614_v43 }
 0x124   : > { %3427 = vmatprep.subr.bf16.mxu0 %v3616_v60 }
 0x125   : > { %3452 = vmatpush3.bf16.msra.mxu1 %v3613_v35 }
 0x126   : > { %3445 = vmatprep.subr.bf16.mxu1 %v3614_v43 }
 0x127   : > { %3428 = vmatpush3.bf16.msra.mxu0 %v3616_v60 }
 0x128   : > { %3429 = vmatprep.subr.bf16.mxu0 %v3617_v62 }
 0x129   : > { %3453 = vmatpush3.bf16.msra.mxu1 %v3614_v43 }
 0x12a   : > { %3446 = vmatprep.subr.bf16.mxu1 %v3616_v60 }
 0x12b   : > { %3430 = vmatpush3.bf16.msra.mxu0 %v3617_v62 }
 0x12c   : > { %3431 = vmatprep.subr.bf16.mxu0 %v3618_v0 }
 0x12d   : > { %3454 = vmatpush3.bf16.msra.mxu1 %v3616_v60 }
 0x12e   : > { %3447 = vmatprep.subr.bf16.mxu1 %v3617_v62 }
 0x12f   : > { %3432 = vmatpush3.bf16.msra.mxu0 %v3618_v0 }
 0x131   : > { %3455 = vmatpush3.bf16.msra.mxu1 %v3617_v62 }
 0x132   : > { %3434 = vmatmul.mubr.bf16.vlgmr.msra.gmra.mrb[0].mxu0 %v3060_v45  ;;  %3448 = vmatprep.subr.bf16.mxu1 %v3618_v0 }
 0x135   : > { %3456 = vmatpush3.bf16.msra.mxu1 %v3618_v0 }
 0x138   : > { %3438 = vmatmul.mubr.bf16.vlgmr.msra.gmra.mrb[8].mxu1 %v3062_v57 }
 0x1eb   : > { %v3315_v8 = vpop.f32.mrb[0].mxu1 }
 0x1ec   : > { %v1449_v16 = vpop.f32.mrb[1].mxu1 }
 0x1ed   : > { %v3415_v17 = vpop.f32.mrb[4].mxu0  ;;  %v3316_v5 = vpop.f32.mrb[2].mxu1 }
 0x1ee   : > { %v2410_v7 = vpop.f32.mrb[5].mxu0  ;;  %v1452_v42 = vpop.f32.mrb[3].mxu1 }
 0x1ef   : > { %v3416_v63 = vpop.f32.mrb[6].mxu0 }
 0x1f0   : > { %v2413_v9 = vpop.f32.mrb[7].mxu0 }
 0x1f3   : > { %v3319_v21 = vpop.f32.mrb[4].mxu1 }
 0x1f4   : > { %v3461_v20 = vadd.f32 %v3415_v17, %v3319_v21  ;;  %v1465_v51 = vpop.f32.mrb[5].mxu1 }
 0x1f5   : > { %v3463_v41 = vadd.f32 %v2410_v7, %v1465_v51  ;;  %v3320_v55 = vpop.f32.mrb[6].mxu1 }
 0x1f6   : > { %v3465_v10 = vadd.f32 %v3416_v63, %v3320_v55  ;;  %v1468_v12 = vpop.f32.mrb[7].mxu1 }
 0x1f7   : > { %v3467_v14 = vadd.f32 %v2413_v9, %v1468_v12 }
 0x205   : > { %v3435_v15 = vpop.f32.mrb[0].mxu0 }
 0x206   : > { %v3457_v6 = vadd.f32 %v3435_v15, %v3315_v8  ;;  %v2604_v44 = vpop.f32.mrb[1].mxu0 }
 0x207   : > { %v3458_v54 = vadd.f32 %v2604_v44, %v1449_v16  ;;  %v3436_v26 = vpop.f32.mrb[2].mxu0 }
 0x208   : > { %v3459_v28 = vadd.f32 %v3436_v26, %v3316_v5  ;;  %v2607_v38 = vpop.f32.mrb[3].mxu0  ;;  %v2676_v37 = vmul.f32 %v3457_v6, %v3457_v6 }
 0x209   : > { %v3460_v24 = vadd.f32 %v2607_v38, %v1452_v42  ;;  %v2674_v56 = vmul.f32 %v3458_v54, %v3458_v54 }
 0x20a   : > { %v3102_v39 = vpack.c.bf16 %v3459_v28, %v3457_v6  ;;  %v2677_v31 = vmul.f32 %v3459_v28, %v3459_v28 }
 0x20b   : > { %v3097_v46 = vpack.c.bf16 %v3460_v24, %v3458_v54  ;;  %v2660_v48 = vadd.f32 %v3460_v24, %v3458_v54  ;;  %v2675_v40 = vmul.f32 %v3460_v24, %v3460_v24  ;;  %v3439_v30 = vpop.f32.mrb[8].mxu1 }
 0x20c   : > { %3114 = vst [vmem:[%s4380_s15 + $0x8] sm:$0xff] %v3102_v39   ;;  %v3462_v35 = vadd.f32 %v3461_v20, %v3439_v30  ;;  %v2620_v19 = vpop.f32.mrb[9].mxu1 }
 0x20d   : > { %3098 = vst [vmem:[%s4380_s15] sm:$0xff] %v3097_v46   ;;  %v2661_v22 = vadd.f32 %v3457_v6, %v2660_v48  ;;  %v2682_v34 = vadd.f32 %v2675_v40, %v2674_v56  ;;  %v3464_v50 = vadd.f32 %v3463_v41, %v2620_v19  ;;  %v3440_v43 = vpop.f32.mrb[10].mxu1 }
 0x20e   : > { %v3466_v18 = vadd.f32 %v3465_v10, %v3440_v43  ;;  %v2623_v49 = vpop.f32.mrb[11].mxu1  ;;  %v2680_v27 = vmul.f32 %v3462_v35, %v3462_v35 }
 0x20f   : > { %v2683_v59 = vadd.f32 %v2682_v34, %v2676_v37  ;;  %v2662_v29 = vadd.f32 %v3459_v28, %v2661_v22  ;;  %v2678_v60 = vmul.f32 %v3464_v50, %v3464_v50  ;;  %v3468_v62 = vadd.f32 %v3467_v14, %v2623_v49 }
 0x210   : > { %v3112_v0 = vpack.c.bf16 %v3466_v18, %v3462_v35  ;;  %v2681_v61 = vmul.f32 %v3466_v18, %v3466_v18 }
 0x211   : > { %v2663_v53 = vadd.f32 %v3464_v50, %v2662_v29  ;;  %v2684_v2 = vadd.f32 %v2683_v59, %v2677_v31  ;;  %v3107_v3 = vpack.c.bf16 %v3468_v62, %v3464_v50  ;;  %v2679_v52 = vmul.f32 %v3468_v62, %v3468_v62 }
 0x212   : > { %3116 = vst [vmem:[%s4380_s15 + $0x18] sm:$0xff] %v3112_v0  }
 0x213   : > { %v2685_v11 = vadd.f32 %v2684_v2, %v2678_v60  ;;  %3115 = vst [vmem:[%s4380_s15 + $0x10] sm:$0xff] %v3107_v3   ;;  %v2664_v4 = vadd.f32 %v3468_v62, %v2663_v53 }
 0x215   : > { %v2665_v1 = vadd.f32 %v3462_v35, %v2664_v4  ;;  %v2686_v32 = vadd.f32 %v2685_v11, %v2679_v52 }
 0x217   : > { %v2666_v25 = vadd.f32 %v3466_v18, %v2665_v1  ;;  %v2687_v45 = vadd.f32 %v2686_v32, %v2680_v27 }
 0x219   : > { %v2667_v13 = vrot.slane %v2666_v25, 4  ;;  %v2688_v33 = vadd.f32 %v2687_v45, %v2681_v61 }
 0x21b   : > { %v2668_v36 = vadd.f32 %v2667_v13, %v2666_v25  ;;  %v2689_v47 = vrot.slane %v2688_v33, 4 }
 0x21d   : > { %v2669_v58 = vrot.slane %v2668_v36, 2  ;;  %v2690_v57 = vadd.f32 %v2689_v47, %v2688_v33 }
 0x21f   : > { %v2670_v23 = vadd.f32 %v2669_v58, %v2668_v36  ;;  %v2691_v8 = vrot.slane %v2690_v57, 2 }
 0x221   : > { %v2671_v16 = vrot.slane %v2670_v23, 1  ;;  %v2692_v17 = vadd.f32 %v2691_v8, %v2690_v57 }
 0x223   : > { %v2672_v5 = vadd.f32 %v2671_v16, %v2670_v23  ;;  %v2693_v7 = vrot.slane %v2692_v17, 1 }
 0x225   : > { %2673 = vst [vmem:[%s4373_s11] sm:$0x1] %v2672_v5  ;;  %v2694_v42 = vadd.f32 %v2693_v7, %v2692_v17 }
 0x227   : > { %2695 = vst [vmem:[%s4373_s11 + $0x1] sm:$0x1] %v2694_v42 }
 0x228 PF: > { %s18_s24 = sadd.s32 1, %s3627_s24  }
 0x229   : > { %p15_p4 = scmp.ge.s32.totalorder %s18_s24, 4  }
 0x22b   :  { %17 = sbr.rel (!%p15_p4) target bundleno = 1 (0x1), region = 96 }

</bundles_post_ra>
